<compile_context>
chip_gen: v7x
topology: tpu7x:2x2x1
jax: 0.10.0
libtpu: 0.0.40
codegen_flags: <defaults>
</compile_context>

<pallas_src>
import functools

import numpy as np
import jax
import jax.numpy as jnp
from jax.experimental import pallas as pl
from jax.experimental.pallas import tpu as pltpu

# Row indices of the packed per-block bias / LayerNorm slab (f32, width = 3*emb).
R_BQKV, R_BIN, R_BOA = 0, 1, 2          # qkv_proj bias, attn in_proj bias, attn out_proj bias
R_G1, R_BE1 = 3, 4                      # norm1 gamma/beta
R_FB1, R_FB2 = 5, 6                     # ffn.0 / ffn.2 biases
R_G2, R_BE2 = 7, 8                      # norm2 gamma/beta
R_BOUT, R_G3, R_BE3 = 9, 10, 11         # out.0 bias, out.1 gamma/beta
R_BBP = 12                              # box_proj bias (first block only)
NEG_BIG = -1e30                         # additive mask for cross-batch attention pairs


# ----------------------------------------------------------------------------
# Kernel helpers
# ----------------------------------------------------------------------------
def _mm(a, b):
    """MXU matmul: bf16 operands, f32 accumulation."""
    return jnp.dot(a.astype(jnp.bfloat16), b.astype(jnp.bfloat16),
                   preferred_element_type=jnp.float32)


def _mm_nt(a, b):
    """a @ b.T without emitting an in-kernel transpose (contract last dims)."""
    return jax.lax.dot_general(
        a.astype(jnp.bfloat16), b.astype(jnp.bfloat16),
        dimension_numbers=(((1,), (1,)), ((), ())),
        preferred_element_type=jnp.float32)


def _ln(x, g, b, eps=1e-5):
    mu = jnp.mean(x, axis=-1, keepdims=True)
    xc = x - mu
    var = jnp.mean(xc * xc, axis=-1, keepdims=True)
    return xc * jax.lax.rsqrt(var + eps) * g + b


# ----------------------------------------------------------------------------
# Fused kernel: all transformer blocks in one body
# ----------------------------------------------------------------------------
def make_fused_kernel(block_meta, emb, num_heads):
    """block_meta: tuple of (has_box_proj, out_dim) per transformer block."""
    E = emb
    H = num_heads
    hd = E // H
    scale = 1.0 / float(hd) ** 0.5

    def kernel(*refs):
        bf_ref, bp_ref, bias_ref = refs[0], refs[1], refs[2]
        w_refs = refs[3:-1]
        out_ref = refs[-1]

        x = bf_ref[...]                    # (N*L, in_ch) f32; row r belongs to batch r % N
        attn_bias = bias_ref[...]          # (N*L, N*L) f32, 0 (same batch) / -1e30

        wi = 0
        for has_box, out_dim in block_meta:
            if has_box:
                wbp_ref = w_refs[wi]; wi += 1        # (box_ch, in_ch)  bf16
            wqkv_ref = w_refs[wi]; wi += 1           # (in_dim, 3E)     bf16
            we_ref = w_refs[wi]; wi += 1             # (E, 6E+out_dim)  bf16
            vec_ref = w_refs[wi]; wi += 1            # (12|13, 3E)      f32

            def vrow(r, d, _v=vec_ref):
                return _v[r:r + 1, :d]               # (1, d) f32, broadcasts over rows

            if has_box:
                # box_feats = box_feats + box_proj(box_params)
                x = x + _mm(bp_ref[...], wbp_ref[...]) + vrow(R_BBP, x.shape[-1])

            # qkv_proj then chunk
            qkv = _mm(x, wqkv_ref[...]) + vrow(R_BQKV, 3 * E)
            q = qkv[:, :E]
            k = qkv[:, E:2 * E]
            v = qkv[:, 2 * E:]

            # nn.MultiheadAttention in-projection (in_proj_weight.T packed in we[:, :3E])
            bin_ = vrow(R_BIN, 3 * E)
            q2 = _mm(q, we_ref[:, 0:E]) + bin_[:, :E]
            k2 = _mm(k, we_ref[:, E:2 * E]) + bin_[:, E:2 * E]
            v2 = _mm(v, we_ref[:, 2 * E:3 * E]) + bin_[:, 2 * E:]

            # Attention over all N*L rows at once; cross-batch pairs are killed by the
            # additive bias.  Out-projection folded into the head loop (no concat).
            acc = None
            for h in range(H):
                cs = slice(h * hd, (h + 1) * hd)
                s = _mm_nt(q2[:, cs], k2[:, cs]) * scale + attn_bias
                s = s - jnp.max(s, axis=-1, keepdims=True)
                p = jnp.exp(s)
                p = p * pl.reciprocal(jnp.sum(p, axis=-1, keepdims=True), approx=True)
                pv = _mm(p, v2[:, cs])                          # (rows, hd)
                contrib = _mm(pv, we_ref[cs, 3 * E:4 * E])      # (rows, E)
                acc = contrib if acc is None else acc + contrib
            attn = acc + vrow(R_BOA, E)

            # residual: BoxLevelTransformer adds the box_proj-updated feats,
            #           BoxTransformer adds q (the qkv_proj chunk).
            resid = x if has_box else q
            ref1 = _ln(resid + attn, vrow(R_G1, E), vrow(R_BE1, E))

            # FFN
            h1 = jnp.maximum(_mm(ref1, we_ref[:, 4 * E:5 * E]) + vrow(R_FB1, E), 0.0)
            act = _mm(h1, we_ref[:, 5 * E:6 * E]) + vrow(R_FB2, E)
            ref2 = _ln(act + ref1, vrow(R_G2, E), vrow(R_BE2, E))

            # out head: Linear -> LayerNorm -> ReLU
            y = _mm(ref2, we_ref[:, 6 * E:6 * E + out_dim]) + vrow(R_BOUT, out_dim)
            x = jnp.maximum(_ln(y, vrow(R_G3, out_dim), vrow(R_BE3, out_dim)), 0.0)

        # NOTE: out_ch < 128 means a masked (non lane-dense) store; it is a single tiny
        # store in the fused kernel, so harmless.  Pad channels to 128 if this ever
        # matters on v5e and downstream allows it.
        out_ref[...] = x.astype(out_ref.dtype)

    return kernel


# ----------------------------------------------------------------------------
# Host-side packing (done once at init) and the fused forward wrapper
# ----------------------------------------------------------------------------
def pack_params(blocks_params, *, emb):
    """Pre-transpose weights to (in, out), cast MXU weights to bf16, and pack each
    block's biases / LayerNorm params into a single f32 slab."""
    width = 3 * emb
    block_meta = []
    packed = []
    for p in blocks_params:
        has_box = "box_w" in p
        out_dim = p["out_w"].shape[0]
        block_meta.append((has_box, out_dim))
        if has_box:
            packed.append(jnp.asarray(p["box_w"].T, jnp.bfloat16))
        packed.append(jnp.asarray(p["qkv_w"].T, jnp.bfloat16))
        we = jnp.concatenate(
            [p["in_w"].T, p["oa_w"].T, p["f1_w"].T, p["f2_w"].T, p["out_w"].T], axis=1)
        packed.append(we.astype(jnp.bfloat16))
        rows = [p["qkv_b"], p["in_b"], p["oa_b"], p["g1"], p["be1"],
                p["f1_b"], p["f2_b"], p["g2"], p["be2"],
                p["out_b"], p["g3"], p["be3"]]
        if has_box:
            rows.append(p["box_b"])
        vec = jnp.stack([jnp.pad(r, (0, width - r.shape[0])) for r in rows])
        packed.append(vec.astype(jnp.float32))
    return tuple(block_meta), packed


def fused_forward(box_feats, box_params, packed_weights, *, block_meta, emb, num_heads):
    """box_feats: (L, N, in_ch); box_params: (L, N, box_ch).  Returns (L, N, out_ch)."""
    L, N, in_ch = box_feats.shape
    box_ch = box_params.shape[-1]
    rows = L * N
    out_ch = block_meta[-1][1]

    # Free layout change (plain reshape, no transpose / HBM copy): row r = l*N + n.
    bf2 = box_feats.reshape(rows, in_ch)
    bp2 = box_params.reshape(rows, box_ch)

    # Block-diagonal additive bias: rows r, c attend iff r % N == c % N (same batch).
    # Built with numpy -> baked as a constant under jit.
    rid = np.arange(rows) % N
    attn_bias = jnp.asarray(
        np.where(rid[:, None] == rid[None, :], 0.0, NEG_BIG), dtype=jnp.float32)

    inputs = [bf2, bp2, attn_bias, *packed_weights]

    def full_spec(a):
        return pl.BlockSpec(a.shape, lambda i, _nd=a.ndim: (0,) * _nd)

    out2 = pl.pallas_call(
        make_fused_kernel(block_meta, emb, num_heads),
        out_shape=jax.ShapeDtypeStruct((rows, out_ch), jnp.float32),
        grid=(1,),                                   # everything fits in VMEM; no grid loop
        in_specs=[full_spec(a) for a in inputs],
        out_specs=pl.BlockSpec((rows, out_ch), lambda i: (0, 0)),
        compiler_params=pltpu.CompilerParams(dimension_semantics=("arbitrary",)),
    )(*inputs)
    return out2.reshape(L, N, out_ch)


# ----------------------------------------------------------------------------
# Deterministic parameter init (shapes per the PyTorch module __init__)
# ----------------------------------------------------------------------------
def init_linear(key, out_dim, in_dim, scale=0.1):
    k1, k2 = jax.random.split(key)
    w = jax.random.uniform(k1, (out_dim, in_dim), jnp.float32, -scale, scale)
    b = jax.random.uniform(k2, (out_dim,), jnp.float32, -scale, scale)
    return w, b


def init_ln(key, dim):
    k1, k2 = jax.random.split(key)
    g = 1.0 + 0.05 * jax.random.uniform(k1, (dim,), jnp.float32, -1.0, 1.0)
    b = 0.05 * jax.random.uniform(k2, (dim,), jnp.float32, -1.0, 1.0)
    return g, b


def make_params(key, *, in_ch, emb, out, box_ch=None):
    keys = jax.random.split(key, 10)
    p = {}
    i = 0
    if box_ch is not None:
        p["box_w"], p["box_b"] = init_linear(keys[i], in_ch, box_ch); i += 1
    p["qkv_w"], p["qkv_b"] = init_linear(keys[i], 3 * emb, in_ch); i += 1
    p["in_w"], p["in_b"] = init_linear(keys[i], 3 * emb, emb); i += 1     # attn.in_proj
    p["oa_w"], p["oa_b"] = init_linear(keys[i], emb, emb); i += 1         # attn.out_proj
    p["g1"], p["be1"] = init_ln(keys[i], emb); i += 1                     # norm1
    p["f1_w"], p["f1_b"] = init_linear(keys[i], emb, emb); i += 1         # ffn.0
    p["f2_w"], p["f2_b"] = init_linear(keys[i], emb, emb); i += 1         # ffn.2
    p["g2"], p["be2"] = init_ln(keys[i], emb); i += 1                     # norm2
    p["out_w"], p["out_b"] = init_linear(keys[i], out, emb); i += 1       # out.0
    p["g3"], p["be3"] = init_ln(keys[i], out); i += 1                     # out.1
    return p


# ----------------------------------------------------------------------------
# Pure-JAX f32 reference (mirrors PyTorch semantics) for correctness check
# ----------------------------------------------------------------------------
def _ln_ref(x, g, b, eps=1e-5):
    mu = x.mean(-1, keepdims=True)
    var = ((x - mu) ** 2).mean(-1, keepdims=True)
    return (x - mu) / jnp.sqrt(var + eps) * g + b


def ref_block(x, p, num_heads, box_params=None):
    E = p["oa_w"].shape[0]
    H = num_heads
    hd = E // H
    L, N, _ = x.shape
    if "box_w" in p:
        x = x + box_params @ p["box_w"].T + p["box_b"]
    qkv = x @ p["qkv_w"].T + p["qkv_b"]
    q, k, v = qkv[..., :E], qkv[..., E:2 * E], qkv[..., 2 * E:]
    q2 = q @ p["in_w"][:E].T + p["in_b"][:E]
    k2 = k @ p["in_w"][E:2 * E].T + p["in_b"][E:2 * E]
    v2 = v @ p["in_w"][2 * E:].T + p["in_b"][2 * E:]

    def heads(t):
        return jnp.transpose(t.reshape(L, N, H, hd), (1, 2, 0, 3))   # (N, H, L, hd)

    qh, kh, vh = heads(q2), heads(k2), heads(v2)
    s = jnp.einsum("nhld,nhmd->nhlm", qh, kh) / np.sqrt(float(hd))
    a = jax.nn.softmax(s, axis=-1)
    o = jnp.einsum("nhlm,nhmd->nhld", a, vh)
    o = jnp.transpose(o, (2, 0, 1, 3)).reshape(L, N, E)
    attn = o @ p["oa_w"].T + p["oa_b"]

    resid = x if "box_w" in p else q
    r1 = _ln_ref(resid + attn, p["g1"], p["be1"])
    h1 = jax.nn.relu(r1 @ p["f1_w"].T + p["f1_b"])
    act = h1 @ p["f2_w"].T + p["f2_b"]
    r2 = _ln_ref(act + r1, p["g2"], p["be2"])
    y = r2 @ p["out_w"].T + p["out_b"]
    return jax.nn.relu(_ln_ref(y, p["g3"], p["be3"]))


# ----------------------------------------------------------------------------
if __name__ == "__main__":
    L, N = 8, 2                          # seq (num boxes), batch
    box_ch, in_ch, emb_ch, out_ch = 8, 32, 32, 32
    num_heads, block_num = 2, 2          # block_num=2 exercises both sub-modules

    key = jax.random.PRNGKey(0)
    k_bf, k_bp, k_p1, k_p2 = jax.random.split(key, 4)
    box_feats = jax.random.normal(k_bf, (L, N, in_ch), jnp.float32)
    box_params = jax.random.normal(k_bp, (L, N, box_ch), jnp.float32)

    blocks = [make_params(k_p1, in_ch=in_ch, emb=emb_ch, out=emb_ch, box_ch=box_ch)]
    for i in range(block_num - 1):
        final_out = out_ch if i == block_num - 2 else emb_ch
        blocks.append(make_params(jax.random.fold_in(k_p2, i),
                                  in_ch=emb_ch, emb=emb_ch, out=final_out))

    block_meta, packed = pack_params(blocks, emb=emb_ch)
    fwd = jax.jit(functools.partial(fused_forward, block_meta=block_meta,
                                    emb=emb_ch, num_heads=num_heads))
    out = jax.block_until_ready(fwd(box_feats, box_params, packed))

    ref = ref_block(box_feats, blocks[0], num_heads, box_params=box_params)
    for p in blocks[1:]:
        ref = ref_block(ref, p, num_heads)

    assert out.shape == (L, N, out_ch), out.shape
    assert bool(jnp.all(jnp.isfinite(out)))
    # bf16 MXU (f32 accumulate) vs. pure-f32 reference: expected drift is O(1e-2);
    # genuine indexing/semantics bugs would be orders of magnitude larger.
    if not jnp.allclose(out, ref, atol=5e-2, rtol=2e-2):
        err = float(jnp.max(jnp.abs(out - ref)))
        raise AssertionError(f"Pallas output mismatch vs JAX reference (max |diff|={err})")
    print("KERNEL_OK")
</pallas_src>

<mosaic_0001>
module attributes {stable_mosaic.version = 11 : i64} {
  func.func @kernel(%arg0: i32, %arg1: memref<16x32xf32, #tpu.memory_space<vmem>>, %arg2: memref<16x8xf32, #tpu.memory_space<vmem>>, %arg3: memref<16x16xf32, #tpu.memory_space<vmem>>, %arg4: memref<8x32xbf16, #tpu.memory_space<vmem>>, %arg5: memref<32x96xbf16, #tpu.memory_space<vmem>>, %arg6: memref<32x224xbf16, #tpu.memory_space<vmem>>, %arg7: memref<13x96xf32, #tpu.memory_space<vmem>>, %arg8: memref<32x96xbf16, #tpu.memory_space<vmem>>, %arg9: memref<32x224xbf16, #tpu.memory_space<vmem>>, %arg10: memref<12x96xf32, #tpu.memory_space<vmem>>, %arg11: memref<16x32xf32, #tpu.memory_space<vmem>>) attributes {dimension_semantics = [#tpu.dimension_semantics<arbitrary>], iteration_bounds = array<i64: 1>, scalar_prefetch = 0 : i64, scratch_operands = 0 : i64, tpu.core_type = #tpu.core_type<tc>, window_params = [{pipeline_mode = #tpu.pipeline_mode<synchronous>, transform_indices = @transform_0, window_bounds = array<i64: 16, 32>}, {pipeline_mode = #tpu.pipeline_mode<synchronous>, transform_indices = @transform_1, window_bounds = array<i64: 16, 8>}, {pipeline_mode = #tpu.pipeline_mode<synchronous>, transform_indices = @transform_2, window_bounds = array<i64: 16, 16>}, {pipeline_mode = #tpu.pipeline_mode<synchronous>, transform_indices = @transform_3, window_bounds = array<i64: 8, 32>}, {pipeline_mode = #tpu.pipeline_mode<synchronous>, transform_indices = @transform_4, window_bounds = array<i64: 32, 96>}, {pipeline_mode = #tpu.pipeline_mode<synchronous>, transform_indices = @transform_5, window_bounds = array<i64: 32, 224>}, {pipeline_mode = #tpu.pipeline_mode<synchronous>, transform_indices = @transform_6, window_bounds = array<i64: 13, 96>}, {pipeline_mode = #tpu.pipeline_mode<synchronous>, transform_indices = @transform_7, window_bounds = array<i64: 32, 96>}, {pipeline_mode = #tpu.pipeline_mode<synchronous>, transform_indices = @transform_8, window_bounds = array<i64: 32, 224>}, {pipeline_mode = #tpu.pipeline_mode<synchronous>, transform_indices = @transform_9, window_bounds = array<i64: 12, 96>}, {pipeline_mode = #tpu.pipeline_mode<synchronous>, transform_indices = @transform_10, window_bounds = array<i64: 16, 32>}]} {
    %c0 = arith.constant 0 : index
    %c0_0 = arith.constant 0 : index
    %0 = vector.load %arg1[%c0, %c0_0] : memref<16x32xf32, #tpu.memory_space<vmem>>, vector<16x32xf32>
    %c0_1 = arith.constant 0 : index
    %c0_2 = arith.constant 0 : index
    %1 = vector.load %arg3[%c0_1, %c0_2] : memref<16x16xf32, #tpu.memory_space<vmem>>, vector<16x16xf32>
    %c0_3 = arith.constant 0 : index
    %c0_4 = arith.constant 0 : index
    %2 = vector.load %arg2[%c0_3, %c0_4] : memref<16x8xf32, #tpu.memory_space<vmem>>, vector<16x8xf32>
    %c0_5 = arith.constant 0 : index
    %c0_6 = arith.constant 0 : index
    %3 = vector.load %arg4[%c0_5, %c0_6] : memref<8x32xbf16, #tpu.memory_space<vmem>>, vector<8x32xbf16>
    %4 = arith.truncf %2 : vector<16x8xf32> to vector<16x8xbf16>
    %cst = arith.constant dense<0.000000e+00> : vector<16x32xf32>
    %5 = tpu.matmul %4, %3, %cst {dimension_numbers = #tpu.dot_dimension_numbers<[1], [0], [0], [1], [0, 0, 1, 1], [], []>} : vector<16x8xbf16>, vector<8x32xbf16>, vector<16x32xf32> -> vector<16x32xf32>
    %6 = arith.addf %0, %5 : vector<16x32xf32>
    %c12 = arith.constant 12 : index
    %c0_7 = arith.constant 0 : index
    %7 = vector.load %arg7[%c12, %c0_7] : memref<13x96xf32, #tpu.memory_space<vmem>>, vector<1x32xf32>
    %8 = vector.broadcast %7 : vector<1x32xf32> to vector<16x32xf32>
    %9 = arith.addf %6, %8 : vector<16x32xf32>
    %c0_8 = arith.constant 0 : index
    %c0_9 = arith.constant 0 : index
    %10 = vector.load %arg5[%c0_8, %c0_9] : memref<32x96xbf16, #tpu.memory_space<vmem>>, vector<32x96xbf16>
    %11 = arith.truncf %9 : vector<16x32xf32> to vector<16x32xbf16>
    %cst_10 = arith.constant dense<0.000000e+00> : vector<16x96xf32>
    %12 = tpu.matmul %11, %10, %cst_10 {dimension_numbers = #tpu.dot_dimension_numbers<[1], [0], [0], [1], [0, 0, 1, 1], [], []>} : vector<16x32xbf16>, vector<32x96xbf16>, vector<16x96xf32> -> vector<16x96xf32>
    %c0_11 = arith.constant 0 : index
    %c0_12 = arith.constant 0 : index
    %13 = vector.load %arg7[%c0_11, %c0_12] : memref<13x96xf32, #tpu.memory_space<vmem>>, vector<1x96xf32>
    %14 = vector.broadcast %13 : vector<1x96xf32> to vector<16x96xf32>
    %15 = arith.addf %12, %14 : vector<16x96xf32>
    %16 = vector.extract_strided_slice %15 {offsets = [0, 0], sizes = [16, 32], strides = [1, 1]} : vector<16x96xf32> to vector<16x32xf32>
    %17 = vector.extract_strided_slice %15 {offsets = [0, 32], sizes = [16, 32], strides = [1, 1]} : vector<16x96xf32> to vector<16x32xf32>
    %18 = vector.extract_strided_slice %15 {offsets = [0, 64], sizes = [16, 32], strides = [1, 1]} : vector<16x96xf32> to vector<16x32xf32>
    %c1 = arith.constant 1 : index
    %c0_13 = arith.constant 0 : index
    %19 = vector.load %arg7[%c1, %c0_13] : memref<13x96xf32, #tpu.memory_space<vmem>>, vector<1x96xf32>
    %c0_14 = arith.constant 0 : index
    %c0_15 = arith.constant 0 : index
    %20 = vector.load %arg6[%c0_14, %c0_15] : memref<32x224xbf16, #tpu.memory_space<vmem>>, vector<32x32xbf16>
    %21 = arith.truncf %16 : vector<16x32xf32> to vector<16x32xbf16>
    %cst_16 = arith.constant dense<0.000000e+00> : vector<16x32xf32>
    %22 = tpu.matmul %21, %20, %cst_16 {dimension_numbers = #tpu.dot_dimension_numbers<[1], [0], [0], [1], [0, 0, 1, 1], [], []>} : vector<16x32xbf16>, vector<32x32xbf16>, vector<16x32xf32> -> vector<16x32xf32>
    %23 = vector.extract_strided_slice %19 {offsets = [0, 0], sizes = [1, 32], strides = [1, 1]} : vector<1x96xf32> to vector<1x32xf32>
    %24 = vector.broadcast %23 : vector<1x32xf32> to vector<16x32xf32>
    %25 = arith.addf %22, %24 : vector<16x32xf32>
    %c0_17 = arith.constant 0 : index
    %c32 = arith.constant 32 : index
    %26 = vector.load %arg6[%c0_17, %c32] : memref<32x224xbf16, #tpu.memory_space<vmem>>, vector<32x32xbf16>
    %27 = arith.truncf %17 : vector<16x32xf32> to vector<16x32xbf16>
    %cst_18 = arith.constant dense<0.000000e+00> : vector<16x32xf32>
    %28 = tpu.matmul %27, %26, %cst_18 {dimension_numbers = #tpu.dot_dimension_numbers<[1], [0], [0], [1], [0, 0, 1, 1], [], []>} : vector<16x32xbf16>, vector<32x32xbf16>, vector<16x32xf32> -> vector<16x32xf32>
    %29 = vector.extract_strided_slice %19 {offsets = [0, 32], sizes = [1, 32], strides = [1, 1]} : vector<1x96xf32> to vector<1x32xf32>
    %30 = vector.broadcast %29 : vector<1x32xf32> to vector<16x32xf32>
    %31 = arith.addf %28, %30 : vector<16x32xf32>
    %c0_19 = arith.constant 0 : index
    %c64 = arith.constant 64 : index
    %32 = vector.load %arg6[%c0_19, %c64] : memref<32x224xbf16, #tpu.memory_space<vmem>>, vector<32x32xbf16>
    %33 = arith.truncf %18 : vector<16x32xf32> to vector<16x32xbf16>
    %cst_20 = arith.constant dense<0.000000e+00> : vector<16x32xf32>
    %34 = tpu.matmul %33, %32, %cst_20 {dimension_numbers = #tpu.dot_dimension_numbers<[1], [0], [0], [1], [0, 0, 1, 1], [], []>} : vector<16x32xbf16>, vector<32x32xbf16>, vector<16x32xf32> -> vector<16x32xf32>
    %35 = vector.extract_strided_slice %19 {offsets = [0, 64], sizes = [1, 32], strides = [1, 1]} : vector<1x96xf32> to vector<1x32xf32>
    %36 = vector.broadcast %35 : vector<1x32xf32> to vector<16x32xf32>
    %37 = arith.addf %34, %36 : vector<16x32xf32>
    %38 = vector.extract_strided_slice %25 {offsets = [0, 0], sizes = [16, 16], strides = [1, 1]} : vector<16x32xf32> to vector<16x16xf32>
    %39 = vector.extract_strided_slice %31 {offsets = [0, 0], sizes = [16, 16], strides = [1, 1]} : vector<16x32xf32> to vector<16x16xf32>
    %40 = arith.truncf %38 : vector<16x16xf32> to vector<16x16xbf16>
    %41 = arith.truncf %39 : vector<16x16xf32> to vector<16x16xbf16>
    %cst_21 = arith.constant dense<0.000000e+00> : vector<16x16xf32>
    %42 = tpu.matmul %40, %41, %cst_21 {dimension_numbers = #tpu.dot_dimension_numbers<[1], [1], [0], [0], [0, 0, 1, 0], [], []>} : vector<16x16xbf16>, vector<16x16xbf16>, vector<16x16xf32> -> vector<16x16xf32>
    %cst_22 = arith.constant 2.500000e-01 : f32
    %43 = vector.broadcast %cst_22 : f32 to vector<16x16xf32>
    %44 = arith.mulf %42, %43 : vector<16x16xf32>
    %45 = arith.addf %44, %1 : vector<16x16xf32>
    %cst_23 = arith.constant dense<0xFF800000> : vector<16xf32>
    %46 = vector.multi_reduction <maximumf>, %45, %cst_23 [1] : vector<16x16xf32> to vector<16xf32>
    %47 = vector.shape_cast %46 : vector<16xf32> to vector<16x1xf32>
    %48 = vector.broadcast %47 : vector<16x1xf32> to vector<16x16xf32>
    %49 = arith.subf %45, %48 : vector<16x16xf32>
    %50 = math.exp %49 : vector<16x16xf32>
    %cst_24 = arith.constant dense<0.000000e+00> : vector<16xf32>
    %51 = vector.multi_reduction <add>, %50, %cst_24 [1] : vector<16x16xf32> to vector<16xf32>
    %52 = vector.shape_cast %51 : vector<16xf32> to vector<16x1xf32>
    %53 = tpu.reciprocal %52 {approx = true} : vector<16x1xf32> -> vector<16x1xf32>
    %54 = vector.broadcast %53 : vector<16x1xf32> to vector<16x16xf32>
    %55 = arith.mulf %50, %54 : vector<16x16xf32>
    %56 = vector.extract_strided_slice %37 {offsets = [0, 0], sizes = [16, 16], strides = [1, 1]} : vector<16x32xf32> to vector<16x16xf32>
    %57 = arith.truncf %55 : vector<16x16xf32> to vector<16x16xbf16>
    %58 = arith.truncf %56 : vector<16x16xf32> to vector<16x16xbf16>
    %cst_25 = arith.constant dense<0.000000e+00> : vector<16x16xf32>
    %59 = tpu.matmul %57, %58, %cst_25 {dimension_numbers = #tpu.dot_dimension_numbers<[1], [0], [0], [1], [0, 0, 1, 1], [], []>} : vector<16x16xbf16>, vector<16x16xbf16>, vector<16x16xf32> -> vector<16x16xf32>
    %c0_26 = arith.constant 0 : index
    %c96 = arith.constant 96 : index
    %60 = vector.load %arg6[%c0_26, %c96] : memref<32x224xbf16, #tpu.memory_space<vmem>>, vector<16x32xbf16>
    %61 = arith.truncf %59 : vector<16x16xf32> to vector<16x16xbf16>
    %cst_27 = arith.constant dense<0.000000e+00> : vector<16x32xf32>
    %62 = tpu.matmul %61, %60, %cst_27 {dimension_numbers = #tpu.dot_dimension_numbers<[1], [0], [0], [1], [0, 0, 1, 1], [], []>} : vector<16x16xbf16>, vector<16x32xbf16>, vector<16x32xf32> -> vector<16x32xf32>
    %63 = vector.extract_strided_slice %25 {offsets = [0, 16], sizes = [16, 16], strides = [1, 1]} : vector<16x32xf32> to vector<16x16xf32>
    %64 = vector.extract_strided_slice %31 {offsets = [0, 16], sizes = [16, 16], strides = [1, 1]} : vector<16x32xf32> to vector<16x16xf32>
    %65 = arith.truncf %63 : vector<16x16xf32> to vector<16x16xbf16>
    %66 = arith.truncf %64 : vector<16x16xf32> to vector<16x16xbf16>
    %cst_28 = arith.constant dense<0.000000e+00> : vector<16x16xf32>
    %67 = tpu.matmul %65, %66, %cst_28 {dimension_numbers = #tpu.dot_dimension_numbers<[1], [1], [0], [0], [0, 0, 1, 0], [], []>} : vector<16x16xbf16>, vector<16x16xbf16>, vector<16x16xf32> -> vector<16x16xf32>
    %cst_29 = arith.constant 2.500000e-01 : f32
    %68 = vector.broadcast %cst_29 : f32 to vector<16x16xf32>
    %69 = arith.mulf %67, %68 : vector<16x16xf32>
    %70 = arith.addf %69, %1 : vector<16x16xf32>
    %cst_30 = arith.constant dense<0xFF800000> : vector<16xf32>
    %71 = vector.multi_reduction <maximumf>, %70, %cst_30 [1] : vector<16x16xf32> to vector<16xf32>
    %72 = vector.shape_cast %71 : vector<16xf32> to vector<16x1xf32>
    %73 = vector.broadcast %72 : vector<16x1xf32> to vector<16x16xf32>
    %74 = arith.subf %70, %73 : vector<16x16xf32>
    %75 = math.exp %74 : vector<16x16xf32>
    %cst_31 = arith.constant dense<0.000000e+00> : vector<16xf32>
    %76 = vector.multi_reduction <add>, %75, %cst_31 [1] : vector<16x16xf32> to vector<16xf32>
    %77 = vector.shape_cast %76 : vector<16xf32> to vector<16x1xf32>
    %78 = tpu.reciprocal %77 {approx = true} : vector<16x1xf32> -> vector<16x1xf32>
    %79 = vector.broadcast %78 : vector<16x1xf32> to vector<16x16xf32>
    %80 = arith.mulf %75, %79 : vector<16x16xf32>
    %81 = vector.extract_strided_slice %37 {offsets = [0, 16], sizes = [16, 16], strides = [1, 1]} : vector<16x32xf32> to vector<16x16xf32>
    %82 = arith.truncf %80 : vector<16x16xf32> to vector<16x16xbf16>
    %83 = arith.truncf %81 : vector<16x16xf32> to vector<16x16xbf16>
    %cst_32 = arith.constant dense<0.000000e+00> : vector<16x16xf32>
    %84 = tpu.matmul %82, %83, %cst_32 {dimension_numbers = #tpu.dot_dimension_numbers<[1], [0], [0], [1], [0, 0, 1, 1], [], []>} : vector<16x16xbf16>, vector<16x16xbf16>, vector<16x16xf32> -> vector<16x16xf32>
    %c16 = arith.constant 16 : index
    %c96_33 = arith.constant 96 : index
    %85 = vector.load %arg6[%c16, %c96_33] : memref<32x224xbf16, #tpu.memory_space<vmem>>, vector<16x32xbf16>
    %86 = arith.truncf %84 : vector<16x16xf32> to vector<16x16xbf16>
    %cst_34 = arith.constant dense<0.000000e+00> : vector<16x32xf32>
    %87 = tpu.matmul %86, %85, %cst_34 {dimension_numbers = #tpu.dot_dimension_numbers<[1], [0], [0], [1], [0, 0, 1, 1], [], []>} : vector<16x16xbf16>, vector<16x32xbf16>, vector<16x32xf32> -> vector<16x32xf32>
    %88 = arith.addf %62, %87 : vector<16x32xf32>
    %c2 = arith.constant 2 : index
    %c0_35 = arith.constant 0 : index
    %89 = vector.load %arg7[%c2, %c0_35] : memref<13x96xf32, #tpu.memory_space<vmem>>, vector<1x32xf32>
    %90 = vector.broadcast %89 : vector<1x32xf32> to vector<16x32xf32>
    %91 = arith.addf %88, %90 : vector<16x32xf32>
    %92 = arith.addf %9, %91 : vector<16x32xf32>
    %c3 = arith.constant 3 : index
    %c0_36 = arith.constant 0 : index
    %93 = vector.load %arg7[%c3, %c0_36] : memref<13x96xf32, #tpu.memory_space<vmem>>, vector<1x32xf32>
    %c4 = arith.constant 4 : index
    %c0_37 = arith.constant 0 : index
    %94 = vector.load %arg7[%c4, %c0_37] : memref<13x96xf32, #tpu.memory_space<vmem>>, vector<1x32xf32>
    %cst_38 = arith.constant dense<0.000000e+00> : vector<16xf32>
    %95 = vector.multi_reduction <add>, %92, %cst_38 [1] : vector<16x32xf32> to vector<16xf32>
    %96 = vector.shape_cast %95 : vector<16xf32> to vector<16x1xf32>
    %cst_39 = arith.constant 3.200000e+01 : f32
    %97 = vector.broadcast %cst_39 : f32 to vector<16x1xf32>
    %98 = arith.divf %96, %97 : vector<16x1xf32>
    %99 = vector.broadcast %98 : vector<16x1xf32> to vector<16x32xf32>
    %100 = arith.subf %92, %99 : vector<16x32xf32>
    %101 = arith.mulf %100, %100 : vector<16x32xf32>
    %cst_40 = arith.constant dense<0.000000e+00> : vector<16xf32>
    %102 = vector.multi_reduction <add>, %101, %cst_40 [1] : vector<16x32xf32> to vector<16xf32>
    %103 = vector.shape_cast %102 : vector<16xf32> to vector<16x1xf32>
    %cst_41 = arith.constant 3.200000e+01 : f32
    %104 = vector.broadcast %cst_41 : f32 to vector<16x1xf32>
    %105 = arith.divf %103, %104 : vector<16x1xf32>
    %cst_42 = arith.constant 9.99999974E-6 : f32
    %106 = vector.broadcast %cst_42 : f32 to vector<16x1xf32>
    %107 = arith.addf %105, %106 : vector<16x1xf32>
    %108 = math.rsqrt %107 : vector<16x1xf32>
    %109 = vector.broadcast %108 : vector<16x1xf32> to vector<16x32xf32>
    %110 = arith.mulf %100, %109 : vector<16x32xf32>
    %111 = vector.broadcast %93 : vector<1x32xf32> to vector<16x32xf32>
    %112 = arith.mulf %110, %111 : vector<16x32xf32>
    %113 = vector.broadcast %94 : vector<1x32xf32> to vector<16x32xf32>
    %114 = arith.addf %112, %113 : vector<16x32xf32>
    %c0_43 = arith.constant 0 : index
    %c128 = arith.constant 128 : index
    %115 = vector.load %arg6[%c0_43, %c128] : memref<32x224xbf16, #tpu.memory_space<vmem>>, vector<32x32xbf16>
    %116 = arith.truncf %114 : vector<16x32xf32> to vector<16x32xbf16>
    %cst_44 = arith.constant dense<0.000000e+00> : vector<16x32xf32>
    %117 = tpu.matmul %116, %115, %cst_44 {dimension_numbers = #tpu.dot_dimension_numbers<[1], [0], [0], [1], [0, 0, 1, 1], [], []>} : vector<16x32xbf16>, vector<32x32xbf16>, vector<16x32xf32> -> vector<16x32xf32>
    %c5 = arith.constant 5 : index
    %c0_45 = arith.constant 0 : index
    %118 = vector.load %arg7[%c5, %c0_45] : memref<13x96xf32, #tpu.memory_space<vmem>>, vector<1x32xf32>
    %119 = vector.broadcast %118 : vector<1x32xf32> to vector<16x32xf32>
    %120 = arith.addf %117, %119 : vector<16x32xf32>
    %cst_46 = arith.constant 0.000000e+00 : f32
    %121 = vector.broadcast %cst_46 : f32 to vector<16x32xf32>
    %122 = arith.maximumf %120, %121 : vector<16x32xf32>
    %c0_47 = arith.constant 0 : index
    %c160 = arith.constant 160 : index
    %123 = vector.load %arg6[%c0_47, %c160] : memref<32x224xbf16, #tpu.memory_space<vmem>>, vector<32x32xbf16>
    %124 = arith.truncf %122 : vector<16x32xf32> to vector<16x32xbf16>
    %cst_48 = arith.constant dense<0.000000e+00> : vector<16x32xf32>
    %125 = tpu.matmul %124, %123, %cst_48 {dimension_numbers = #tpu.dot_dimension_numbers<[1], [0], [0], [1], [0, 0, 1, 1], [], []>} : vector<16x32xbf16>, vector<32x32xbf16>, vector<16x32xf32> -> vector<16x32xf32>
    %c6 = arith.constant 6 : index
    %c0_49 = arith.constant 0 : index
    %126 = vector.load %arg7[%c6, %c0_49] : memref<13x96xf32, #tpu.memory_space<vmem>>, vector<1x32xf32>
    %127 = vector.broadcast %126 : vector<1x32xf32> to vector<16x32xf32>
    %128 = arith.addf %125, %127 : vector<16x32xf32>
    %129 = arith.addf %128, %114 : vector<16x32xf32>
    %c7 = arith.constant 7 : index
    %c0_50 = arith.constant 0 : index
    %130 = vector.load %arg7[%c7, %c0_50] : memref<13x96xf32, #tpu.memory_space<vmem>>, vector<1x32xf32>
    %c8 = arith.constant 8 : index
    %c0_51 = arith.constant 0 : index
    %131 = vector.load %arg7[%c8, %c0_51] : memref<13x96xf32, #tpu.memory_space<vmem>>, vector<1x32xf32>
    %cst_52 = arith.constant dense<0.000000e+00> : vector<16xf32>
    %132 = vector.multi_reduction <add>, %129, %cst_52 [1] : vector<16x32xf32> to vector<16xf32>
    %133 = vector.shape_cast %132 : vector<16xf32> to vector<16x1xf32>
    %cst_53 = arith.constant 3.200000e+01 : f32
    %134 = vector.broadcast %cst_53 : f32 to vector<16x1xf32>
    %135 = arith.divf %133, %134 : vector<16x1xf32>
    %136 = vector.broadcast %135 : vector<16x1xf32> to vector<16x32xf32>
    %137 = arith.subf %129, %136 : vector<16x32xf32>
    %138 = arith.mulf %137, %137 : vector<16x32xf32>
    %cst_54 = arith.constant dense<0.000000e+00> : vector<16xf32>
    %139 = vector.multi_reduction <add>, %138, %cst_54 [1] : vector<16x32xf32> to vector<16xf32>
    %140 = vector.shape_cast %139 : vector<16xf32> to vector<16x1xf32>
    %cst_55 = arith.constant 3.200000e+01 : f32
    %141 = vector.broadcast %cst_55 : f32 to vector<16x1xf32>
    %142 = arith.divf %140, %141 : vector<16x1xf32>
    %cst_56 = arith.constant 9.99999974E-6 : f32
    %143 = vector.broadcast %cst_56 : f32 to vector<16x1xf32>
    %144 = arith.addf %142, %143 : vector<16x1xf32>
    %145 = math.rsqrt %144 : vector<16x1xf32>
    %146 = vector.broadcast %145 : vector<16x1xf32> to vector<16x32xf32>
    %147 = arith.mulf %137, %146 : vector<16x32xf32>
    %148 = vector.broadcast %130 : vector<1x32xf32> to vector<16x32xf32>
    %149 = arith.mulf %147, %148 : vector<16x32xf32>
    %150 = vector.broadcast %131 : vector<1x32xf32> to vector<16x32xf32>
    %151 = arith.addf %149, %150 : vector<16x32xf32>
    %c0_57 = arith.constant 0 : index
    %c192 = arith.constant 192 : index
    %152 = vector.load %arg6[%c0_57, %c192] : memref<32x224xbf16, #tpu.memory_space<vmem>>, vector<32x32xbf16>
    %153 = arith.truncf %151 : vector<16x32xf32> to vector<16x32xbf16>
    %cst_58 = arith.constant dense<0.000000e+00> : vector<16x32xf32>
    %154 = tpu.matmul %153, %152, %cst_58 {dimension_numbers = #tpu.dot_dimension_numbers<[1], [0], [0], [1], [0, 0, 1, 1], [], []>} : vector<16x32xbf16>, vector<32x32xbf16>, vector<16x32xf32> -> vector<16x32xf32>
    %c9 = arith.constant 9 : index
    %c0_59 = arith.constant 0 : index
    %155 = vector.load %arg7[%c9, %c0_59] : memref<13x96xf32, #tpu.memory_space<vmem>>, vector<1x32xf32>
    %156 = vector.broadcast %155 : vector<1x32xf32> to vector<16x32xf32>
    %157 = arith.addf %154, %156 : vector<16x32xf32>
    %c10 = arith.constant 10 : index
    %c0_60 = arith.constant 0 : index
    %158 = vector.load %arg7[%c10, %c0_60] : memref<13x96xf32, #tpu.memory_space<vmem>>, vector<1x32xf32>
    %c11 = arith.constant 11 : index
    %c0_61 = arith.constant 0 : index
    %159 = vector.load %arg7[%c11, %c0_61] : memref<13x96xf32, #tpu.memory_space<vmem>>, vector<1x32xf32>
    %cst_62 = arith.constant dense<0.000000e+00> : vector<16xf32>
    %160 = vector.multi_reduction <add>, %157, %cst_62 [1] : vector<16x32xf32> to vector<16xf32>
    %161 = vector.shape_cast %160 : vector<16xf32> to vector<16x1xf32>
    %cst_63 = arith.constant 3.200000e+01 : f32
    %162 = vector.broadcast %cst_63 : f32 to vector<16x1xf32>
    %163 = arith.divf %161, %162 : vector<16x1xf32>
    %164 = vector.broadcast %163 : vector<16x1xf32> to vector<16x32xf32>
    %165 = arith.subf %157, %164 : vector<16x32xf32>
    %166 = arith.mulf %165, %165 : vector<16x32xf32>
    %cst_64 = arith.constant dense<0.000000e+00> : vector<16xf32>
    %167 = vector.multi_reduction <add>, %166, %cst_64 [1] : vector<16x32xf32> to vector<16xf32>
    %168 = vector.shape_cast %167 : vector<16xf32> to vector<16x1xf32>
    %cst_65 = arith.constant 3.200000e+01 : f32
    %169 = vector.broadcast %cst_65 : f32 to vector<16x1xf32>
    %170 = arith.divf %168, %169 : vector<16x1xf32>
    %cst_66 = arith.constant 9.99999974E-6 : f32
    %171 = vector.broadcast %cst_66 : f32 to vector<16x1xf32>
    %172 = arith.addf %170, %171 : vector<16x1xf32>
    %173 = math.rsqrt %172 : vector<16x1xf32>
    %174 = vector.broadcast %173 : vector<16x1xf32> to vector<16x32xf32>
    %175 = arith.mulf %165, %174 : vector<16x32xf32>
    %176 = vector.broadcast %158 : vector<1x32xf32> to vector<16x32xf32>
    %177 = arith.mulf %175, %176 : vector<16x32xf32>
    %178 = vector.broadcast %159 : vector<1x32xf32> to vector<16x32xf32>
    %179 = arith.addf %177, %178 : vector<16x32xf32>
    %cst_67 = arith.constant 0.000000e+00 : f32
    %180 = vector.broadcast %cst_67 : f32 to vector<16x32xf32>
    %181 = arith.maximumf %179, %180 : vector<16x32xf32>
    %c0_68 = arith.constant 0 : index
    %c0_69 = arith.constant 0 : index
    %182 = vector.load %arg8[%c0_68, %c0_69] : memref<32x96xbf16, #tpu.memory_space<vmem>>, vector<32x96xbf16>
    %183 = arith.truncf %181 : vector<16x32xf32> to vector<16x32xbf16>
    %cst_70 = arith.constant dense<0.000000e+00> : vector<16x96xf32>
    %184 = tpu.matmul %183, %182, %cst_70 {dimension_numbers = #tpu.dot_dimension_numbers<[1], [0], [0], [1], [0, 0, 1, 1], [], []>} : vector<16x32xbf16>, vector<32x96xbf16>, vector<16x96xf32> -> vector<16x96xf32>
    %c0_71 = arith.constant 0 : index
    %c0_72 = arith.constant 0 : index
    %185 = vector.load %arg10[%c0_71, %c0_72] : memref<12x96xf32, #tpu.memory_space<vmem>>, vector<1x96xf32>
    %186 = vector.broadcast %185 : vector<1x96xf32> to vector<16x96xf32>
    %187 = arith.addf %184, %186 : vector<16x96xf32>
    %188 = vector.extract_strided_slice %187 {offsets = [0, 0], sizes = [16, 32], strides = [1, 1]} : vector<16x96xf32> to vector<16x32xf32>
    %189 = vector.extract_strided_slice %187 {offsets = [0, 32], sizes = [16, 32], strides = [1, 1]} : vector<16x96xf32> to vector<16x32xf32>
    %190 = vector.extract_strided_slice %187 {offsets = [0, 64], sizes = [16, 32], strides = [1, 1]} : vector<16x96xf32> to vector<16x32xf32>
    %c1_73 = arith.constant 1 : index
    %c0_74 = arith.constant 0 : index
    %191 = vector.load %arg10[%c1_73, %c0_74] : memref<12x96xf32, #tpu.memory_space<vmem>>, vector<1x96xf32>
    %c0_75 = arith.constant 0 : index
    %c0_76 = arith.constant 0 : index
    %192 = vector.load %arg9[%c0_75, %c0_76] : memref<32x224xbf16, #tpu.memory_space<vmem>>, vector<32x32xbf16>
    %193 = arith.truncf %188 : vector<16x32xf32> to vector<16x32xbf16>
    %cst_77 = arith.constant dense<0.000000e+00> : vector<16x32xf32>
    %194 = tpu.matmul %193, %192, %cst_77 {dimension_numbers = #tpu.dot_dimension_numbers<[1], [0], [0], [1], [0, 0, 1, 1], [], []>} : vector<16x32xbf16>, vector<32x32xbf16>, vector<16x32xf32> -> vector<16x32xf32>
    %195 = vector.extract_strided_slice %191 {offsets = [0, 0], sizes = [1, 32], strides = [1, 1]} : vector<1x96xf32> to vector<1x32xf32>
    %196 = vector.broadcast %195 : vector<1x32xf32> to vector<16x32xf32>
    %197 = arith.addf %194, %196 : vector<16x32xf32>
    %c0_78 = arith.constant 0 : index
    %c32_79 = arith.constant 32 : index
    %198 = vector.load %arg9[%c0_78, %c32_79] : memref<32x224xbf16, #tpu.memory_space<vmem>>, vector<32x32xbf16>
    %199 = arith.truncf %189 : vector<16x32xf32> to vector<16x32xbf16>
    %cst_80 = arith.constant dense<0.000000e+00> : vector<16x32xf32>
    %200 = tpu.matmul %199, %198, %cst_80 {dimension_numbers = #tpu.dot_dimension_numbers<[1], [0], [0], [1], [0, 0, 1, 1], [], []>} : vector<16x32xbf16>, vector<32x32xbf16>, vector<16x32xf32> -> vector<16x32xf32>
    %201 = vector.extract_strided_slice %191 {offsets = [0, 32], sizes = [1, 32], strides = [1, 1]} : vector<1x96xf32> to vector<1x32xf32>
    %202 = vector.broadcast %201 : vector<1x32xf32> to vector<16x32xf32>
    %203 = arith.addf %200, %202 : vector<16x32xf32>
    %c0_81 = arith.constant 0 : index
    %c64_82 = arith.constant 64 : index
    %204 = vector.load %arg9[%c0_81, %c64_82] : memref<32x224xbf16, #tpu.memory_space<vmem>>, vector<32x32xbf16>
    %205 = arith.truncf %190 : vector<16x32xf32> to vector<16x32xbf16>
    %cst_83 = arith.constant dense<0.000000e+00> : vector<16x32xf32>
    %206 = tpu.matmul %205, %204, %cst_83 {dimension_numbers = #tpu.dot_dimension_numbers<[1], [0], [0], [1], [0, 0, 1, 1], [], []>} : vector<16x32xbf16>, vector<32x32xbf16>, vector<16x32xf32> -> vector<16x32xf32>
    %207 = vector.extract_strided_slice %191 {offsets = [0, 64], sizes = [1, 32], strides = [1, 1]} : vector<1x96xf32> to vector<1x32xf32>
    %208 = vector.broadcast %207 : vector<1x32xf32> to vector<16x32xf32>
    %209 = arith.addf %206, %208 : vector<16x32xf32>
    %210 = vector.extract_strided_slice %197 {offsets = [0, 0], sizes = [16, 16], strides = [1, 1]} : vector<16x32xf32> to vector<16x16xf32>
    %211 = vector.extract_strided_slice %203 {offsets = [0, 0], sizes = [16, 16], strides = [1, 1]} : vector<16x32xf32> to vector<16x16xf32>
    %212 = arith.truncf %210 : vector<16x16xf32> to vector<16x16xbf16>
    %213 = arith.truncf %211 : vector<16x16xf32> to vector<16x16xbf16>
    %cst_84 = arith.constant dense<0.000000e+00> : vector<16x16xf32>
    %214 = tpu.matmul %212, %213, %cst_84 {dimension_numbers = #tpu.dot_dimension_numbers<[1], [1], [0], [0], [0, 0, 1, 0], [], []>} : vector<16x16xbf16>, vector<16x16xbf16>, vector<16x16xf32> -> vector<16x16xf32>
    %cst_85 = arith.constant 2.500000e-01 : f32
    %215 = vector.broadcast %cst_85 : f32 to vector<16x16xf32>
    %216 = arith.mulf %214, %215 : vector<16x16xf32>
    %217 = arith.addf %216, %1 : vector<16x16xf32>
    %cst_86 = arith.constant dense<0xFF800000> : vector<16xf32>
    %218 = vector.multi_reduction <maximumf>, %217, %cst_86 [1] : vector<16x16xf32> to vector<16xf32>
    %219 = vector.shape_cast %218 : vector<16xf32> to vector<16x1xf32>
    %220 = vector.broadcast %219 : vector<16x1xf32> to vector<16x16xf32>
    %221 = arith.subf %217, %220 : vector<16x16xf32>
    %222 = math.exp %221 : vector<16x16xf32>
    %cst_87 = arith.constant dense<0.000000e+00> : vector<16xf32>
    %223 = vector.multi_reduction <add>, %222, %cst_87 [1] : vector<16x16xf32> to vector<16xf32>
    %224 = vector.shape_cast %223 : vector<16xf32> to vector<16x1xf32>
    %225 = tpu.reciprocal %224 {approx = true} : vector<16x1xf32> -> vector<16x1xf32>
    %226 = vector.broadcast %225 : vector<16x1xf32> to vector<16x16xf32>
    %227 = arith.mulf %222, %226 : vector<16x16xf32>
    %228 = vector.extract_strided_slice %209 {offsets = [0, 0], sizes = [16, 16], strides = [1, 1]} : vector<16x32xf32> to vector<16x16xf32>
    %229 = arith.truncf %227 : vector<16x16xf32> to vector<16x16xbf16>
    %230 = arith.truncf %228 : vector<16x16xf32> to vector<16x16xbf16>
    %cst_88 = arith.constant dense<0.000000e+00> : vector<16x16xf32>
    %231 = tpu.matmul %229, %230, %cst_88 {dimension_numbers = #tpu.dot_dimension_numbers<[1], [0], [0], [1], [0, 0, 1, 1], [], []>} : vector<16x16xbf16>, vector<16x16xbf16>, vector<16x16xf32> -> vector<16x16xf32>
    %c0_89 = arith.constant 0 : index
    %c96_90 = arith.constant 96 : index
    %232 = vector.load %arg9[%c0_89, %c96_90] : memref<32x224xbf16, #tpu.memory_space<vmem>>, vector<16x32xbf16>
    %233 = arith.truncf %231 : vector<16x16xf32> to vector<16x16xbf16>
    %cst_91 = arith.constant dense<0.000000e+00> : vector<16x32xf32>
    %234 = tpu.matmul %233, %232, %cst_91 {dimension_numbers = #tpu.dot_dimension_numbers<[1], [0], [0], [1], [0, 0, 1, 1], [], []>} : vector<16x16xbf16>, vector<16x32xbf16>, vector<16x32xf32> -> vector<16x32xf32>
    %235 = vector.extract_strided_slice %197 {offsets = [0, 16], sizes = [16, 16], strides = [1, 1]} : vector<16x32xf32> to vector<16x16xf32>
    %236 = vector.extract_strided_slice %203 {offsets = [0, 16], sizes = [16, 16], strides = [1, 1]} : vector<16x32xf32> to vector<16x16xf32>
    %237 = arith.truncf %235 : vector<16x16xf32> to vector<16x16xbf16>
    %238 = arith.truncf %236 : vector<16x16xf32> to vector<16x16xbf16>
    %cst_92 = arith.constant dense<0.000000e+00> : vector<16x16xf32>
    %239 = tpu.matmul %237, %238, %cst_92 {dimension_numbers = #tpu.dot_dimension_numbers<[1], [1], [0], [0], [0, 0, 1, 0], [], []>} : vector<16x16xbf16>, vector<16x16xbf16>, vector<16x16xf32> -> vector<16x16xf32>
    %cst_93 = arith.constant 2.500000e-01 : f32
    %240 = vector.broadcast %cst_93 : f32 to vector<16x16xf32>
    %241 = arith.mulf %239, %240 : vector<16x16xf32>
    %242 = arith.addf %241, %1 : vector<16x16xf32>
    %cst_94 = arith.constant dense<0xFF800000> : vector<16xf32>
    %243 = vector.multi_reduction <maximumf>, %242, %cst_94 [1] : vector<16x16xf32> to vector<16xf32>
    %244 = vector.shape_cast %243 : vector<16xf32> to vector<16x1xf32>
    %245 = vector.broadcast %244 : vector<16x1xf32> to vector<16x16xf32>
    %246 = arith.subf %242, %245 : vector<16x16xf32>
    %247 = math.exp %246 : vector<16x16xf32>
    %cst_95 = arith.constant dense<0.000000e+00> : vector<16xf32>
    %248 = vector.multi_reduction <add>, %247, %cst_95 [1] : vector<16x16xf32> to vector<16xf32>
    %249 = vector.shape_cast %248 : vector<16xf32> to vector<16x1xf32>
    %250 = tpu.reciprocal %249 {approx = true} : vector<16x1xf32> -> vector<16x1xf32>
    %251 = vector.broadcast %250 : vector<16x1xf32> to vector<16x16xf32>
    %252 = arith.mulf %247, %251 : vector<16x16xf32>
    %253 = vector.extract_strided_slice %209 {offsets = [0, 16], sizes = [16, 16], strides = [1, 1]} : vector<16x32xf32> to vector<16x16xf32>
    %254 = arith.truncf %252 : vector<16x16xf32> to vector<16x16xbf16>
    %255 = arith.truncf %253 : vector<16x16xf32> to vector<16x16xbf16>
    %cst_96 = arith.constant dense<0.000000e+00> : vector<16x16xf32>
    %256 = tpu.matmul %254, %255, %cst_96 {dimension_numbers = #tpu.dot_dimension_numbers<[1], [0], [0], [1], [0, 0, 1, 1], [], []>} : vector<16x16xbf16>, vector<16x16xbf16>, vector<16x16xf32> -> vector<16x16xf32>
    %c16_97 = arith.constant 16 : index
    %c96_98 = arith.constant 96 : index
    %257 = vector.load %arg9[%c16_97, %c96_98] : memref<32x224xbf16, #tpu.memory_space<vmem>>, vector<16x32xbf16>
    %258 = arith.truncf %256 : vector<16x16xf32> to vector<16x16xbf16>
    %cst_99 = arith.constant dense<0.000000e+00> : vector<16x32xf32>
    %259 = tpu.matmul %258, %257, %cst_99 {dimension_numbers = #tpu.dot_dimension_numbers<[1], [0], [0], [1], [0, 0, 1, 1], [], []>} : vector<16x16xbf16>, vector<16x32xbf16>, vector<16x32xf32> -> vector<16x32xf32>
    %260 = arith.addf %234, %259 : vector<16x32xf32>
    %c2_100 = arith.constant 2 : index
    %c0_101 = arith.constant 0 : index
    %261 = vector.load %arg10[%c2_100, %c0_101] : memref<12x96xf32, #tpu.memory_space<vmem>>, vector<1x32xf32>
    %262 = vector.broadcast %261 : vector<1x32xf32> to vector<16x32xf32>
    %263 = arith.addf %260, %262 : vector<16x32xf32>
    %264 = arith.addf %188, %263 : vector<16x32xf32>
    %c3_102 = arith.constant 3 : index
    %c0_103 = arith.constant 0 : index
    %265 = vector.load %arg10[%c3_102, %c0_103] : memref<12x96xf32, #tpu.memory_space<vmem>>, vector<1x32xf32>
    %c4_104 = arith.constant 4 : index
    %c0_105 = arith.constant 0 : index
    %266 = vector.load %arg10[%c4_104, %c0_105] : memref<12x96xf32, #tpu.memory_space<vmem>>, vector<1x32xf32>
    %cst_106 = arith.constant dense<0.000000e+00> : vector<16xf32>
    %267 = vector.multi_reduction <add>, %264, %cst_106 [1] : vector<16x32xf32> to vector<16xf32>
    %268 = vector.shape_cast %267 : vector<16xf32> to vector<16x1xf32>
    %cst_107 = arith.constant 3.200000e+01 : f32
    %269 = vector.broadcast %cst_107 : f32 to vector<16x1xf32>
    %270 = arith.divf %268, %269 : vector<16x1xf32>
    %271 = vector.broadcast %270 : vector<16x1xf32> to vector<16x32xf32>
    %272 = arith.subf %264, %271 : vector<16x32xf32>
    %273 = arith.mulf %272, %272 : vector<16x32xf32>
    %cst_108 = arith.constant dense<0.000000e+00> : vector<16xf32>
    %274 = vector.multi_reduction <add>, %273, %cst_108 [1] : vector<16x32xf32> to vector<16xf32>
    %275 = vector.shape_cast %274 : vector<16xf32> to vector<16x1xf32>
    %cst_109 = arith.constant 3.200000e+01 : f32
    %276 = vector.broadcast %cst_109 : f32 to vector<16x1xf32>
    %277 = arith.divf %275, %276 : vector<16x1xf32>
    %cst_110 = arith.constant 9.99999974E-6 : f32
    %278 = vector.broadcast %cst_110 : f32 to vector<16x1xf32>
    %279 = arith.addf %277, %278 : vector<16x1xf32>
    %280 = math.rsqrt %279 : vector<16x1xf32>
    %281 = vector.broadcast %280 : vector<16x1xf32> to vector<16x32xf32>
    %282 = arith.mulf %272, %281 : vector<16x32xf32>
    %283 = vector.broadcast %265 : vector<1x32xf32> to vector<16x32xf32>
    %284 = arith.mulf %282, %283 : vector<16x32xf32>
    %285 = vector.broadcast %266 : vector<1x32xf32> to vector<16x32xf32>
    %286 = arith.addf %284, %285 : vector<16x32xf32>
    %c0_111 = arith.constant 0 : index
    %c128_112 = arith.constant 128 : index
    %287 = vector.load %arg9[%c0_111, %c128_112] : memref<32x224xbf16, #tpu.memory_space<vmem>>, vector<32x32xbf16>
    %288 = arith.truncf %286 : vector<16x32xf32> to vector<16x32xbf16>
    %cst_113 = arith.constant dense<0.000000e+00> : vector<16x32xf32>
    %289 = tpu.matmul %288, %287, %cst_113 {dimension_numbers = #tpu.dot_dimension_numbers<[1], [0], [0], [1], [0, 0, 1, 1], [], []>} : vector<16x32xbf16>, vector<32x32xbf16>, vector<16x32xf32> -> vector<16x32xf32>
    %c5_114 = arith.constant 5 : index
    %c0_115 = arith.constant 0 : index
    %290 = vector.load %arg10[%c5_114, %c0_115] : memref<12x96xf32, #tpu.memory_space<vmem>>, vector<1x32xf32>
    %291 = vector.broadcast %290 : vector<1x32xf32> to vector<16x32xf32>
    %292 = arith.addf %289, %291 : vector<16x32xf32>
    %cst_116 = arith.constant 0.000000e+00 : f32
    %293 = vector.broadcast %cst_116 : f32 to vector<16x32xf32>
    %294 = arith.maximumf %292, %293 : vector<16x32xf32>
    %c0_117 = arith.constant 0 : index
    %c160_118 = arith.constant 160 : index
    %295 = vector.load %arg9[%c0_117, %c160_118] : memref<32x224xbf16, #tpu.memory_space<vmem>>, vector<32x32xbf16>
    %296 = arith.truncf %294 : vector<16x32xf32> to vector<16x32xbf16>
    %cst_119 = arith.constant dense<0.000000e+00> : vector<16x32xf32>
    %297 = tpu.matmul %296, %295, %cst_119 {dimension_numbers = #tpu.dot_dimension_numbers<[1], [0], [0], [1], [0, 0, 1, 1], [], []>} : vector<16x32xbf16>, vector<32x32xbf16>, vector<16x32xf32> -> vector<16x32xf32>
    %c6_120 = arith.constant 6 : index
    %c0_121 = arith.constant 0 : index
    %298 = vector.load %arg10[%c6_120, %c0_121] : memref<12x96xf32, #tpu.memory_space<vmem>>, vector<1x32xf32>
    %299 = vector.broadcast %298 : vector<1x32xf32> to vector<16x32xf32>
    %300 = arith.addf %297, %299 : vector<16x32xf32>
    %301 = arith.addf %300, %286 : vector<16x32xf32>
    %c7_122 = arith.constant 7 : index
    %c0_123 = arith.constant 0 : index
    %302 = vector.load %arg10[%c7_122, %c0_123] : memref<12x96xf32, #tpu.memory_space<vmem>>, vector<1x32xf32>
    %c8_124 = arith.constant 8 : index
    %c0_125 = arith.constant 0 : index
    %303 = vector.load %arg10[%c8_124, %c0_125] : memref<12x96xf32, #tpu.memory_space<vmem>>, vector<1x32xf32>
    %cst_126 = arith.constant dense<0.000000e+00> : vector<16xf32>
    %304 = vector.multi_reduction <add>, %301, %cst_126 [1] : vector<16x32xf32> to vector<16xf32>
    %305 = vector.shape_cast %304 : vector<16xf32> to vector<16x1xf32>
    %cst_127 = arith.constant 3.200000e+01 : f32
    %306 = vector.broadcast %cst_127 : f32 to vector<16x1xf32>
    %307 = arith.divf %305, %306 : vector<16x1xf32>
    %308 = vector.broadcast %307 : vector<16x1xf32> to vector<16x32xf32>
    %309 = arith.subf %301, %308 : vector<16x32xf32>
    %310 = arith.mulf %309, %309 : vector<16x32xf32>
    %cst_128 = arith.constant dense<0.000000e+00> : vector<16xf32>
    %311 = vector.multi_reduction <add>, %310, %cst_128 [1] : vector<16x32xf32> to vector<16xf32>
    %312 = vector.shape_cast %311 : vector<16xf32> to vector<16x1xf32>
    %cst_129 = arith.constant 3.200000e+01 : f32
    %313 = vector.broadcast %cst_129 : f32 to vector<16x1xf32>
    %314 = arith.divf %312, %313 : vector<16x1xf32>
    %cst_130 = arith.constant 9.99999974E-6 : f32
    %315 = vector.broadcast %cst_130 : f32 to vector<16x1xf32>
    %316 = arith.addf %314, %315 : vector<16x1xf32>
    %317 = math.rsqrt %316 : vector<16x1xf32>
    %318 = vector.broadcast %317 : vector<16x1xf32> to vector<16x32xf32>
    %319 = arith.mulf %309, %318 : vector<16x32xf32>
    %320 = vector.broadcast %302 : vector<1x32xf32> to vector<16x32xf32>
    %321 = arith.mulf %319, %320 : vector<16x32xf32>
    %322 = vector.broadcast %303 : vector<1x32xf32> to vector<16x32xf32>
    %323 = arith.addf %321, %322 : vector<16x32xf32>
    %c0_131 = arith.constant 0 : index
    %c192_132 = arith.constant 192 : index
    %324 = vector.load %arg9[%c0_131, %c192_132] : memref<32x224xbf16, #tpu.memory_space<vmem>>, vector<32x32xbf16>
    %325 = arith.truncf %323 : vector<16x32xf32> to vector<16x32xbf16>
    %cst_133 = arith.constant dense<0.000000e+00> : vector<16x32xf32>
    %326 = tpu.matmul %325, %324, %cst_133 {dimension_numbers = #tpu.dot_dimension_numbers<[1], [0], [0], [1], [0, 0, 1, 1], [], []>} : vector<16x32xbf16>, vector<32x32xbf16>, vector<16x32xf32> -> vector<16x32xf32>
    %c9_134 = arith.constant 9 : index
    %c0_135 = arith.constant 0 : index
    %327 = vector.load %arg10[%c9_134, %c0_135] : memref<12x96xf32, #tpu.memory_space<vmem>>, vector<1x32xf32>
    %328 = vector.broadcast %327 : vector<1x32xf32> to vector<16x32xf32>
    %329 = arith.addf %326, %328 : vector<16x32xf32>
    %c10_136 = arith.constant 10 : index
    %c0_137 = arith.constant 0 : index
    %330 = vector.load %arg10[%c10_136, %c0_137] : memref<12x96xf32, #tpu.memory_space<vmem>>, vector<1x32xf32>
    %c11_138 = arith.constant 11 : index
    %c0_139 = arith.constant 0 : index
    %331 = vector.load %arg10[%c11_138, %c0_139] : memref<12x96xf32, #tpu.memory_space<vmem>>, vector<1x32xf32>
    %cst_140 = arith.constant dense<0.000000e+00> : vector<16xf32>
    %332 = vector.multi_reduction <add>, %329, %cst_140 [1] : vector<16x32xf32> to vector<16xf32>
    %333 = vector.shape_cast %332 : vector<16xf32> to vector<16x1xf32>
    %cst_141 = arith.constant 3.200000e+01 : f32
    %334 = vector.broadcast %cst_141 : f32 to vector<16x1xf32>
    %335 = arith.divf %333, %334 : vector<16x1xf32>
    %336 = vector.broadcast %335 : vector<16x1xf32> to vector<16x32xf32>
    %337 = arith.subf %329, %336 : vector<16x32xf32>
    %338 = arith.mulf %337, %337 : vector<16x32xf32>
    %cst_142 = arith.constant dense<0.000000e+00> : vector<16xf32>
    %339 = vector.multi_reduction <add>, %338, %cst_142 [1] : vector<16x32xf32> to vector<16xf32>
    %340 = vector.shape_cast %339 : vector<16xf32> to vector<16x1xf32>
    %cst_143 = arith.constant 3.200000e+01 : f32
    %341 = vector.broadcast %cst_143 : f32 to vector<16x1xf32>
    %342 = arith.divf %340, %341 : vector<16x1xf32>
    %cst_144 = arith.constant 9.99999974E-6 : f32
    %343 = vector.broadcast %cst_144 : f32 to vector<16x1xf32>
    %344 = arith.addf %342, %343 : vector<16x1xf32>
    %345 = math.rsqrt %344 : vector<16x1xf32>
    %346 = vector.broadcast %345 : vector<16x1xf32> to vector<16x32xf32>
    %347 = arith.mulf %337, %346 : vector<16x32xf32>
    %348 = vector.broadcast %330 : vector<1x32xf32> to vector<16x32xf32>
    %349 = arith.mulf %347, %348 : vector<16x32xf32>
    %350 = vector.broadcast %331 : vector<1x32xf32> to vector<16x32xf32>
    %351 = arith.addf %349, %350 : vector<16x32xf32>
    %cst_145 = arith.constant 0.000000e+00 : f32
    %352 = vector.broadcast %cst_145 : f32 to vector<16x32xf32>
    %353 = arith.maximumf %351, %352 : vector<16x32xf32>
    %c0_146 = arith.constant 0 : index
    %c0_147 = arith.constant 0 : index
    %354 = vector.load %arg11[%c0_146, %c0_147] : memref<16x32xf32, #tpu.memory_space<vmem>>, vector<16x32xf32>
    tpu.vector_store %arg11[%c0_146, %c0_147], %353 {strides = array<i32>} : memref<16x32xf32, #tpu.memory_space<vmem>>, vector<16x32xf32>,
    return
  }
  func.func @transform_0(%arg0: i32) -> (i32, i32) {
    %c0_i32 = arith.constant 0 : i32
    %c0_i32_0 = arith.constant 0 : i32
    %c0_i32_1 = arith.constant 0 : i32
    return %c0_i32, %c0_i32_0 : i32, i32
  }
  func.func @transform_1(%arg0: i32) -> (i32, i32) {
    %c0_i32 = arith.constant 0 : i32
    %c0_i32_0 = arith.constant 0 : i32
    %c0_i32_1 = arith.constant 0 : i32
    return %c0_i32, %c0_i32_0 : i32, i32
  }
  func.func @transform_2(%arg0: i32) -> (i32, i32) {
    %c0_i32 = arith.constant 0 : i32
    %c0_i32_0 = arith.constant 0 : i32
    %c0_i32_1 = arith.constant 0 : i32
    return %c0_i32, %c0_i32_0 : i32, i32
  }
  func.func @transform_3(%arg0: i32) -> (i32, i32) {
    %c0_i32 = arith.constant 0 : i32
    %c0_i32_0 = arith.constant 0 : i32
    %c0_i32_1 = arith.constant 0 : i32
    return %c0_i32, %c0_i32_0 : i32, i32
  }
  func.func @transform_4(%arg0: i32) -> (i32, i32) {
    %c0_i32 = arith.constant 0 : i32
    %c0_i32_0 = arith.constant 0 : i32
    %c0_i32_1 = arith.constant 0 : i32
    return %c0_i32, %c0_i32_0 : i32, i32
  }
  func.func @transform_5(%arg0: i32) -> (i32, i32) {
    %c0_i32 = arith.constant 0 : i32
    %c0_i32_0 = arith.constant 0 : i32
    %c0_i32_1 = arith.constant 0 : i32
    return %c0_i32, %c0_i32_0 : i32, i32
  }
  func.func @transform_6(%arg0: i32) -> (i32, i32) {
    %c0_i32 = arith.constant 0 : i32
    %c0_i32_0 = arith.constant 0 : i32
    %c0_i32_1 = arith.constant 0 : i32
    return %c0_i32, %c0_i32_0 : i32, i32
  }
  func.func @transform_7(%arg0: i32) -> (i32, i32) {
    %c0_i32 = arith.constant 0 : i32
    %c0_i32_0 = arith.constant 0 : i32
    %c0_i32_1 = arith.constant 0 : i32
    return %c0_i32, %c0_i32_0 : i32, i32
  }
  func.func @transform_8(%arg0: i32) -> (i32, i32) {
    %c0_i32 = arith.constant 0 : i32
    %c0_i32_0 = arith.constant 0 : i32
    %c0_i32_1 = arith.constant 0 : i32
    return %c0_i32, %c0_i32_0 : i32, i32
  }
  func.func @transform_9(%arg0: i32) -> (i32, i32) {
    %c0_i32 = arith.constant 0 : i32
    %c0_i32_0 = arith.constant 0 : i32
    %c0_i32_1 = arith.constant 0 : i32
    return %c0_i32, %c0_i32_0 : i32, i32
  }
  func.func @transform_10(%arg0: i32) -> (i32, i32) {
    %c0_i32 = arith.constant 0 : i32
    %c0_i32_0 = arith.constant 0 : i32
    %c0_i32_1 = arith.constant 0 : i32
    return %c0_i32, %c0_i32_0 : i32, i32
  }
}

</mosaic_0001>

<bundles_post_ra>
// kernel: fused_forward.1
= control target key start
LH: loop header
LB: loop body
LE: loop exit
PB: predicated region body
PF: predicated region fallthrough
CT: control target
= control target key end

     0   :  { %15 = vsyncpa [#allocation3], 0  ;;  %s3231_s0 = inlined_call_operand.hbm [shape: f32[16,32], index: 0, kind: input, shape index: {}]   ;;  %s3232_s1 = inlined_call_operand.hbm [shape: f32[16,8], index: 1, kind: input, shape index: {}]   ;;  %s3233_s2 = inlined_call_operand.hbm [shape: f32[16,16], index: 2, kind: input, shape index: {}]   ;;  %s3234_s3 = inlined_call_operand.hbm [shape: bf16[8,32], index: 3, kind: input, shape index: {}]   ;;  %s3235_s4 = inlined_call_operand.hbm [shape: bf16[32,96], index: 4, kind: input, shape index: {}]   ;;  %s3236_s5 = inlined_call_operand.hbm [shape: bf16[32,224], index: 5, kind: input, shape index: {}]   ;;  %s3237_s6 = inlined_call_operand.hbm [shape: f32[13,96], index: 6, kind: input, shape index: {}]   ;;  %s3238_s7 = inlined_call_operand.hbm [shape: bf16[32,96], index: 7, kind: input, shape index: {}]   ;;  %s3239_s8 = inlined_call_operand.vmem [shape: bf16[32,224], index: 8, kind: input, shape index: {}]   ;;  %s3240_s9 = inlined_call_operand.hbm [shape: f32[12,96], index: 9, kind: input, shape index: {}]   ;;  %s3241_s10 = inlined_call_operand.hbm [shape: f32[16,32], index: 10, kind: output, shape index: {}]  }
   0x1   :  { %16 = vsyncpa [#allocation6], 0 }
   0x2   :  { %17 = vsyncpa [#allocation9], 0 }
   0x3   :  { %18 = vsyncpa [#allocation12], 0 }
   0x4   :  { %19 = vsyncpa [#allocation15], 0 }
   0x5   :  { %20 = vsyncpa [#allocation4], 0  ;;  %s2712_s13 = smov [#allocation5]   ;;  %s2713_s15 = smov [#allocation8]  }
   0x6   :  { %s38_s14 = sshll.u32 %s2712_s13, 4  ;;  %s63_s16 = sshll.u32 %s2713_s15, 4  ;;  %s39_s14 = int_to_ptr.vmem [resolvable:$true] %s38_s14  ;;  %s64_s16 = int_to_ptr.vmem [resolvable:$true] %s63_s16 }
   0x7   :  { %s2480_s19 = scalar_lea.hbm %s3232_s1, 256 }
   0x8   :  { %p2481_p0 = scmp.ne.s32.totalorder %s3232_s1, %s2480_s19  ;;  %p2484_p1 = scmp.lt.u32.totalorder %s2480_s19, %s3232_s1 }
   0xa   :  { %p2486_p2 = pnand %p2484_p1, %p2481_p0 }
   0xc   :  { %2489 = shalt.err (!%p2486_p2)
}
   0xd   :  { %s2490_s24 = scalar_lea.vmem %s39_s14, 256  ;;  %p2495_p4 = scmp.lt.s32.totalorder %s39_s14, %s39_s14 }
   0xe   :  { %p2491_p3 = scmp.ne.s32.totalorder %s39_s14, %s2490_s24  ;;  %p2496_p5 = scmp.lt.s32.totalorder %s2490_s24, %s2490_s24 }
  0x10   :  { %p2497_p6 = por %p2496_p5, %p2495_p4 }
  0x12   :  { %p2498_p7 = pnand %p2497_p6, %p2491_p3 }
  0x14   :  { %2501 = shalt.err (!%p2498_p7)
}
  0x15   :  { %s2714_s25 = smov 128   ;;  %s2715_s26 = smov 8  }
  0x16   :  { %44 = dma.hbm_to_vmem [thread:$0]  %s3232_s1, 256, %s39_s14, [#allocation6], %s2714_s25, %s2714_s25, %s2715_s26  }
  0x17   :  { %s2502_s11 = scalar_lea.hbm %s3234_s3, 64 }
  0x18   :  { %p2503_p8 = scmp.ne.s32.totalorder %s3234_s3, %s2502_s11  ;;  %p2506_p9 = scmp.lt.u32.totalorder %s2502_s11, %s3234_s3 }
  0x1a   :  { %p2508_p10 = pnand %p2506_p9, %p2503_p8 }
  0x1c   :  { %2511 = shalt.err (!%p2508_p10)
}
  0x1d   :  { %s2512_s18 = scalar_lea.vmem %s64_s16, 64  ;;  %p2517_p12 = scmp.lt.s32.totalorder %s64_s16, %s64_s16 }
  0x1e   :  { %p2513_p11 = scmp.ne.s32.totalorder %s64_s16, %s2512_s18  ;;  %p2518_p13 = scmp.lt.s32.totalorder %s2512_s18, %s2512_s18 }
  0x20   :  { %p2519_p0 = por %p2518_p13, %p2517_p12 }
  0x22   :  { %p2520_p1 = pnand %p2519_p0, %p2513_p11 }
  0x24   :  { %2523 = shalt.err (!%p2520_p1)
}
  0x25   :  { %66 = dma.hbm_to_vmem [thread:$0]  %s3234_s3, 64, %s64_s16, [#allocation9]  }
  0x26   :  { %s2716_s19 = smov [#allocation11]   ;;  %s2524_s23 = scalar_lea.hbm %s3236_s5, 512 }
  0x27   :  { %s84_s20 = sshll.u32 %s2716_s19, 4  ;;  %p2525_p2 = scmp.ne.s32.totalorder %s3236_s5, %s2524_s23  ;;  %s85_s20 = int_to_ptr.vmem [resolvable:$true] %s84_s20 }
  0x28   :  { %p2528_p3 = scmp.lt.u32.totalorder %s2524_s23, %s3236_s5 }
  0x2a   :  { %p2530_p4 = pnand %p2528_p3, %p2525_p2 }
  0x2c   :  { %2533 = shalt.err (!%p2530_p4)
}
  0x2d   :  { %s2534_s30 = scalar_lea.vmem %s85_s20, 512  ;;  %p2539_p6 = scmp.lt.s32.totalorder %s85_s20, %s85_s20 }
  0x2e   :  { %p2535_p5 = scmp.ne.s32.totalorder %s85_s20, %s2534_s30  ;;  %p2540_p7 = scmp.lt.s32.totalorder %s2534_s30, %s2534_s30 }
  0x30   :  { %p2541_p8 = por %p2540_p7, %p2539_p6 }
  0x32   :  { %p2542_p9 = pnand %p2541_p8, %p2535_p5 }
  0x34   :  { %2545 = shalt.err (!%p2542_p9)
}
  0x35   :  { %90 = dma.hbm_to_vmem [thread:$0]  %s3236_s5, 512, %s85_s20, [#allocation12], %s2714_s25, %s2714_s25, %s2715_s26  }
  0x36   :  { %s2717_s11 = smov [#allocation14]   ;;  %s2718_s13 = smov [#allocation2]  }
  0x37   :  { %s108_s12 = sshll.u32 %s2717_s11, 4  ;;  %s26_s15 = sshll.u32 %s2718_s13, 4  ;;  %s109_s12 = int_to_ptr.vmem [resolvable:$true] %s108_s12  ;;  %s27_s15 = int_to_ptr.vmem [resolvable:$true] %s26_s15 }
  0x38   :  { %s2546_s1 = scalar_lea.hbm %s3238_s7, 256 }
  0x39   :  { %p2547_p10 = scmp.ne.s32.totalorder %s3238_s7, %s2546_s1  ;;  %p2550_p11 = scmp.lt.u32.totalorder %s2546_s1, %s3238_s7 }
  0x3b   :  { %p2552_p12 = pnand %p2550_p11, %p2547_p10 }
  0x3d   :  { %2555 = shalt.err (!%p2552_p12)
}
  0x3e   :  { %s2556_s5 = scalar_lea.vmem %s109_s12, 256  ;;  %p2561_p0 = scmp.lt.s32.totalorder %s109_s12, %s109_s12 }
  0x3f   :  { %p2557_p13 = scmp.ne.s32.totalorder %s109_s12, %s2556_s5  ;;  %p2562_p1 = scmp.lt.s32.totalorder %s2556_s5, %s2556_s5 }
  0x41   :  { %p2563_p2 = por %p2562_p1, %p2561_p0 }
  0x43   :  { %p2564_p3 = pnand %p2563_p2, %p2557_p13 }
  0x45   :  { %2567 = shalt.err (!%p2564_p3)
}
  0x46   :  { %s2719_s20 = smov 64   ;;  %s2720_s23 = smov 4  }
  0x47   :  { %114 = dma.hbm_to_vmem [thread:$0]  %s3238_s7, 256, %s109_s12, [#allocation15], %s2719_s20, %s2719_s20, %s2720_s23  }
  0x48   :  { %s2568_s30 = scalar_lea.hbm %s3231_s0, 256 }
  0x49   :  { %p2569_p4 = scmp.ne.s32.totalorder %s3231_s0, %s2568_s30  ;;  %p2572_p5 = scmp.lt.u32.totalorder %s2568_s30, %s3231_s0 }
  0x4b   :  { %p2574_p6 = pnand %p2572_p5, %p2569_p4 }
  0x4d   :  { %2577 = shalt.err (!%p2574_p6)
}
  0x4e   :  { %s2578_s17 = scalar_lea.vmem %s27_s15, 256  ;;  %p2583_p8 = scmp.lt.s32.totalorder %s27_s15, %s27_s15 }
  0x4f   :  { %p2579_p7 = scmp.ne.s32.totalorder %s27_s15, %s2578_s17  ;;  %p2584_p9 = scmp.lt.s32.totalorder %s2578_s17, %s2578_s17 }
  0x51   :  { %p2585_p10 = por %p2584_p9, %p2583_p8 }
  0x53   :  { %p2586_p11 = pnand %p2585_p10, %p2579_p7 }
  0x55   :  { %2589 = shalt.err (!%p2586_p11)
}
  0x56   :  { %32 = dma.hbm_to_vmem [thread:$0]  %s3231_s0, 256, %s27_s15, [#allocation3], %s2714_s25, %s2714_s25, %s2715_s26  }
  0x57   :  { %s2721_s18 = smov [#allocation7]   ;;  %s2722_s14 = smov [#allocation10]  }
  0x58   :  { %s50_s1 = sshll.u32 %s2721_s18, 4  ;;  %s72_s19 = sshll.u32 %s2722_s14, 4  ;;  %s51_s1 = int_to_ptr.vmem [resolvable:$true] %s50_s1  ;;  %s73_s19 = int_to_ptr.vmem [resolvable:$true] %s72_s19 }
  0x59   :  { %s2590_s5 = scalar_lea.hbm %s3233_s2, 256 }
  0x5a   :  { %p2591_p12 = scmp.ne.s32.totalorder %s3233_s2, %s2590_s5  ;;  %p2594_p13 = scmp.lt.u32.totalorder %s2590_s5, %s3233_s2 }
  0x5c   :  { %p2596_p0 = pnand %p2594_p13, %p2591_p12 }
  0x5e   :  { %2599 = shalt.err (!%p2596_p0)
}
  0x5f   :  { %s2600_s0 = scalar_lea.vmem %s51_s1, 256  ;;  %p2605_p2 = scmp.lt.s32.totalorder %s51_s1, %s51_s1 }
  0x60   :  { %p2601_p1 = scmp.ne.s32.totalorder %s51_s1, %s2600_s0  ;;  %p2606_p3 = scmp.lt.s32.totalorder %s2600_s0, %s2600_s0 }
  0x62   :  { %p2607_p4 = por %p2606_p3, %p2605_p2 }
  0x64   :  { %p2608_p5 = pnand %p2607_p4, %p2601_p1 }
  0x66   :  { %2611 = shalt.err (!%p2608_p5)
}
  0x67   :  { %56 = dma.hbm_to_vmem [thread:$0]  %s3233_s2, 256, %s51_s1, [#allocation6], %s2714_s25, %s2714_s25, %s2715_s26  }
  0x68   :  { %s2612_s11 = scalar_lea.hbm %s3235_s4, 256 }
  0x69   :  { %p2613_p6 = scmp.ne.s32.totalorder %s3235_s4, %s2612_s11  ;;  %p2616_p7 = scmp.lt.u32.totalorder %s2612_s11, %s3235_s4 }
  0x6b   :  { %p2618_p8 = pnand %p2616_p7, %p2613_p6 }
  0x6d   :  { %2621 = shalt.err (!%p2618_p8)
}
  0x6e   :  { %s2622_s18 = scalar_lea.vmem %s73_s19, 256  ;;  %p2627_p10 = scmp.lt.s32.totalorder %s73_s19, %s73_s19 }
  0x6f   :  { %p2623_p9 = scmp.ne.s32.totalorder %s73_s19, %s2622_s18  ;;  %p2628_p11 = scmp.lt.s32.totalorder %s2622_s18, %s2622_s18 }
  0x71   :  { %p2629_p12 = por %p2628_p11, %p2627_p10 }
  0x73   :  { %p2630_p13 = pnand %p2629_p12, %p2623_p9 }
  0x75   :  { %2633 = shalt.err (!%p2630_p13)
}
  0x76   :  { %78 = dma.hbm_to_vmem [thread:$0]  %s3235_s4, 256, %s73_s19, [#allocation9], %s2719_s20, %s2719_s20, %s2720_s23  }
  0x77   :  { %s2723_s14 = smov [#allocation13]   ;;  %s2724_s22 = smov [#allocation16]  }
  0x78   :  { %s96_s21 = sshll.u32 %s2723_s14, 4  ;;  %s122_s5 = sshll.u32 %s2724_s22, 4  ;;  %s97_s21 = int_to_ptr.vmem [resolvable:$true] %s96_s21  ;;  %s123_s5 = int_to_ptr.vmem [resolvable:$true] %s122_s5 }
  0x79   :  { %s2634_s28 = scalar_lea.hbm %s3237_s6, 256 }
  0x7a   :  { %p2635_p0 = scmp.ne.s32.totalorder %s3237_s6, %s2634_s28  ;;  %p2638_p1 = scmp.lt.u32.totalorder %s2634_s28, %s3237_s6 }
  0x7c   :  { %p2640_p2 = pnand %p2638_p1, %p2635_p0 }
  0x7e   :  { %2643 = shalt.err (!%p2640_p2)
}
  0x7f   :  { %s2644_s4 = scalar_lea.vmem %s97_s21, 256  ;;  %p2649_p4 = scmp.lt.s32.totalorder %s97_s21, %s97_s21 }
  0x80   :  { %p2645_p3 = scmp.ne.s32.totalorder %s97_s21, %s2644_s4  ;;  %p2650_p5 = scmp.lt.s32.totalorder %s2644_s4, %s2644_s4 }
  0x82   :  { %p2651_p6 = por %p2650_p5, %p2649_p4 }
  0x84   :  { %p2652_p7 = pnand %p2651_p6, %p2645_p3 }
  0x86   :  { %2655 = shalt.err (!%p2652_p7)
}
  0x87   :  { %102 = dma.hbm_to_vmem [thread:$0]  %s3237_s6, 256, %s97_s21, [#allocation12], %s2714_s25, %s2714_s25, %s2715_s26  }
  0x88   :  { %s2656_s11 = scalar_lea.hbm %s3240_s9, 256 }
  0x89   :  { %p2657_p8 = scmp.ne.s32.totalorder %s3240_s9, %s2656_s11  ;;  %p2660_p9 = scmp.lt.u32.totalorder %s2656_s11, %s3240_s9 }
  0x8b   :  { %p2662_p10 = pnand %p2660_p9, %p2657_p8 }
  0x8d   :  { %2665 = shalt.err (!%p2662_p10)
}
  0x8e   :  { %s2666_s18 = scalar_lea.vmem %s123_s5, 256  ;;  %p2671_p12 = scmp.lt.s32.totalorder %s123_s5, %s123_s5 }
  0x8f   :  { %p2667_p11 = scmp.ne.s32.totalorder %s123_s5, %s2666_s18  ;;  %p2672_p13 = scmp.lt.s32.totalorder %s2666_s18, %s2666_s18 }
  0x91   :  { %p2673_p0 = por %p2672_p13, %p2671_p12 }
  0x93   :  { %p2674_p1 = pnand %p2673_p0, %p2667_p11 }
  0x95   :  { %2677 = shalt.err (!%p2674_p1)
}
  0x96   :  { %128 = dma.hbm_to_vmem [thread:$0]  %s3240_s9, 256, %s123_s5, [#allocation15], %s2714_s25, %s2714_s25, %s2715_s26  }
  0x97   :  { %2700 = dma.done.wait [#allocation3], 256  }
  0x98   :  { %2701 = vsyncadd [#allocation3], 4294967040 }
  0x99   :  { %2702 = dma.done.wait [#allocation6], 512  }
  0x9a   :  { %2703 = vsyncadd [#allocation6], 4294966784 }
  0x9b   :  { %2704 = dma.done.wait [#allocation9], 320  }
  0x9c   :  { %2705 = vsyncadd [#allocation9], 4294966976 }
  0x9d   :  { %2706 = dma.done.wait [#allocation12], 768  }
  0x9e   :  { %2707 = vsyncadd [#allocation12], 4294966528 }
  0x9f   :  { %2708 = dma.done.wait [#allocation15], 512  }
  0xa0   :  { %2709 = vsyncadd [#allocation15], 4294966784  ;;  %v2725_v0 = vmov 0.0   ;;  %vm2726_vm0 = vmmov 0   ;;  %vm169_vm1 = vcmask 1043456   ;;  %v161_v2 = vld [vmem:[#allocation5] sm:$0xff] }
  0xa1   :  { %2201 = vmatprep.subr.bf16.mxu0 %v2725_v0  ;;  %2203 = vmatprep.mubr.msk.bf16.mxu0 %vm2726_vm0, %v2725_v0  ;;  %v163_v1 = vld [vmem:[#allocation8] sm:$0xf]  ;;  %v162_v3 = vld [vmem:[#allocation5 + $0x8] sm:$0xff]  ;;  %vm165_vm2 = vcmask 64512   ;;  %v2929_v8 = vld [vmem:[#allocation11] ss:$8 sps:$4 sm:$0xff]  }
  0xa2   :  { %2207 = vmatprep.subr.bf16.mxu1 %v2725_v0  ;;  %2211 = vmatprep.mubr.msk.bf16.mxu1 %vm2726_vm0, %v2725_v0  ;;  %v171_v4 = vsel %vm169_vm1, %v163_v1, 0  ;;  %v164_v5 = vpack.c.bf16 %v162_v3, %v161_v2  ;;  %v2410_v6 = vld [vmem:[#allocation10] sm:$0xff]   ;;  %v2411_v7 = vld [vmem:[#allocation10 + $0x8] sm:$0xff]   ;;  %s2727_s9 = smov 96   ;;  %v158_v11 = vld [vmem:[#allocation2 + $0x8] sm:$0xff]  ;;  %vm245_vm3 = vcmask 261120  }
  0xa3   :  { %2202 = vmatpush3.bf16.msra.mxu0 %v171_v4  ;;  %2208 = vmatpush3.bf16.msra.mxu1 %v2410_v6  ;;  %v157_v9 = vld [vmem:[#allocation2] sm:$0xff]  ;;  %v2068_v14 = vld [vmem:[#allocation13 + $0xc] ss:$0 sm:$0xff]  ;;  %v2944_v21 = vld [vmem:[#allocation11 + $0x10] ss:$8 sps:$4 sm:$0xff]   ;;  %s2728_s1 = smov 112  }
  0xa4   :  { %2215 = vmatprep.subr.bf16.mxu0 %v2725_v0  ;;  %2209 = vmatprep.subr.bf16.mxu1 %v2725_v0  ;;  %v2069_v24 = vld [vmem:[#allocation13] ss:$0 sm:$0xff]  ;;  %v2954_v32 = vld [vmem:[#allocation13 + $0x1] ss:$0 sm:$0xff]  ;;  %vm470_vm4 = vcmask 130048   ;;  %v2989_v61 = vld [vmem:[#allocation7 + $0x8] sm:$0xff] }
  0xa5   :  { %359 = vrot.lane.b32.xlu0 %v2929_v8, %s2727_s9  ;;  %v2987_v57 = vld [vmem:[#allocation7] sm:$0xff]  ;;  %s2729_s14 = smov 32  }
  0xa6   :  { %2204 = vmatmul.mubr.msk.bf16.vlgmr.msra.gmra.mrb[0].mxu0 %vm165_vm2, %v164_v5 }
  0xa7   :  { %2219 = vmatprep.mubr.msk.bf16.mxu0 %vm2726_vm0, %v2725_v0  ;;  %2210 = vmatpush3.bf16.msra.mxu1 %v2411_v7 }
  0xa8   :  { %2223 = vmatprep.subr.bf16.mxu1 %v2725_v0  ;;  %2216 = vmatpush3.bf16.msra.mxu0 %v2929_v8 }
  0xa9   :  { %2217 = vmatprep.subr.bf16.mxu0 %v2725_v0  ;;  %361 = vrot.lane.b32.xlu0 %v2944_v21, %s2727_s9 }
  0xac   :  { %2218 = vmatpush3.bf16.msra.mxu0 %v2944_v21 }
  0xad   :  { %2231 = vmatprep.subr.bf16.mxu0 %v2725_v0 }
 0x117   :  { %v360_v22 = vpop.permute.xlu0 %359 }
 0x11b   :  { %v362_v23 = vpop.permute.xlu0 %361 }
 0x179   :  { %v207_v10 = vpop.f32.mrb[0].mxu0 }
 0x17a   :  { %v214_v12 = vadd.f32 %v207_v10, %v157_v9  ;;  %v2205_v13 = vpop.f32.mrb[1].mxu0 }
 0x17b   :  { %v210_v15 = vpop.f32.mrb[2].mxu0 }
 0x17c   :  { %v215_v16 = vadd.f32 %v210_v15, %v158_v11  ;;  %v2206_v17 = vpop.f32.mrb[3].mxu0  ;;  %v2935_v18 = vadd.f32 %v2068_v14, %v214_v12 }
 0x17e   :  { %v2937_v19 = vadd.f32 %v2068_v14, %v215_v16 }
 0x180   :  { %v227_v20 = vpack.c.bf16 %v2937_v19, %v2935_v18 }
 0x182   :  { %2212 = vmatmul.mubr.msk.bf16.vlgmr.msra.gmra.mrb[0].mxu1 %vm245_vm3, %v227_v20 }
 0x183   :  { %2227 = vmatprep.mubr.msk.bf16.mxu1 %vm2726_vm0, %v2725_v0  ;;  %2224 = vmatpush3.bf16.msra.mxu1 %v360_v22 }
 0x184   :  { %2225 = vmatprep.subr.bf16.mxu1 %v2725_v0 }
 0x187   :  { %2226 = vmatpush3.bf16.msra.mxu1 %v362_v23 }
 0x188   :  { %2239 = vmatprep.subr.bf16.mxu1 %v2725_v0 }
 0x255   :  { %v283_v25 = vpop.f32.mrb[0].mxu1 }
 0x256   :  { %v2213_v26 = vpop.f32.mrb[1].mxu1  ;;  %v284_v28 = vadd.f32 %v2069_v24, %v283_v25 }
 0x257   :  { %v286_v27 = vpop.f32.mrb[2].mxu1 }
 0x258   :  { %v287_v29 = vadd.f32 %v2069_v24, %v286_v27  ;;  %v2214_v30 = vpop.f32.mrb[3].mxu1 }
 0x25a   :  { %v295_v31 = vpack.c.bf16 %v287_v29, %v284_v28 }
 0x25c   :  { %357 = vrot.lane.b32.xlu1 %v295_v31, %s2727_s9  ;;  %2220 = vmatmul.mubr.msk.bf16.vlgmr.msra.gmra.mrb[4].mxu0 %vm245_vm3, %v295_v31 }
 0x25d   :  { %2235 = vmatprep.mubr.msk.bf16.mxu0 %vm2726_vm0, %v2725_v0 }
 0x260   :  { %366 = vrot.lane.b32.xlu1 %v2954_v32, %s2727_s9 }
 0x2ce   :  { %v358_v33 = vpop.permute.xlu1 %357 }
 0x2cf   :  { %2228 = vmatmul.mubr.msk.bf16.vlgmr.msra.gmra.mrb[4].mxu1 %vm245_vm3, %v358_v33 }
 0x2d0   :  { %2241 = vmatprep.mubr.msk.bf16.mxu1 %vm2726_vm0, %v2725_v0 }
 0x2d2   :  { %v367_v41 = vpop.permute.xlu1 %366 }
 0x32f   :  { %v349_v34 = vpop.f32.mrb[4].mxu0 }
 0x330   :  { %v2221_v35 = vpop.f32.mrb[5].mxu0  ;;  %v350_v37 = vadd.f32 %v2954_v32, %v349_v34 }
 0x331   :  { %v352_v36 = vpop.f32.mrb[6].mxu0 }
 0x332   :  { %v353_v38 = vadd.f32 %v2954_v32, %v352_v36  ;;  %v2222_v39 = vpop.f32.mrb[7].mxu0 }
 0x334   :  { %v468_v40 = vpack.c.bf16 %v353_v38, %v350_v37 }
 0x336   :  { %594 = vrot.lane.b32.xlu1 %v468_v40, %s2728_s1 }
 0x33a   :  { %417 = vrot.lane.b32.xlu1 %v2944_v21, %s2719_s20 }
 0x3a2   :  { %v406_v42 = vpop.f32.mrb[4].mxu1 }
 0x3a3   :  { %v2229_v43 = vpop.f32.mrb[5].mxu1  ;;  %v407_v45 = vadd.f32 %v406_v42, %v367_v41 }
 0x3a4   :  { %v409_v44 = vpop.f32.mrb[6].mxu1 }
 0x3a5   :  { %v410_v46 = vadd.f32 %v409_v44, %v367_v41  ;;  %v2230_v47 = vpop.f32.mrb[7].mxu1 }
 0x3a7   :  { %v469_v48 = vpack.c.bf16 %v410_v46, %v407_v45  ;;  %v2414_v45 = vld [vmem:[#allocation11] ss:$8 sps:$4 sm:$0xff]  }
 0x3a8   :  { %v595_v52 = vpop.permute.xlu1 %594 }
 0x3a9   :  { %597 = vrot.lane.b32.xlu0 %v469_v48, %s2728_s1  ;;  %v475_v49 = vsel %vm470_vm4, %v469_v48, 0 }
 0x3aa   :  { %2240 = vmatpush3.bf16.xpose.msra.mxu1 %v475_v49 }
 0x3ab   :  { %2251 = vmatprep.subr.bf16.mxu1 %v2725_v0 }
 0x3ac   :  { %v418_v54 = vpop.permute.xlu1 %417 }
 0x3ad   :  { %415 = vrot.lane.b32.xlu0 %v2929_v8, %s2719_s20 }
 0x3b1   :  { %413 = vrot.lane.b32.xlu0 %v295_v31, %s2719_s20  ;;  %2242 = vmatmul.mubr.msk.bf16.vlgmr.msra.gmra.mrb[8].mxu1 %vm470_vm4, %v468_v40 }
 0x3b2   :  { %2253 = vmatprep.mubr.msk.bf16.mxu1 %vm2726_vm0, %v2725_v0 }
 0x41b   :  { %v598_v50 = vpop.permute.xlu0 %597 }
 0x41c   :  { %v603_v51 = vsel %vm470_vm4, %v598_v50, 0 }
 0x41d   :  { %2252 = vmatpush3.bf16.xpose.msra.mxu1 %v603_v51 }
 0x41e   :  { %2263 = vmatprep.subr.bf16.mxu1 %v2725_v0 }
 0x41f   :  { %v416_v53 = vpop.permute.xlu0 %415 }
 0x420   :  { %2232 = vmatpush3.bf16.msra.mxu0 %v416_v53 }
 0x421   :  { %2233 = vmatprep.subr.bf16.mxu0 %v2725_v0 }
 0x423   :  { %v414_v55 = vpop.permute.xlu0 %413 }
 0x424   :  { %2234 = vmatpush3.bf16.msra.mxu0 %v418_v54  ;;  %2254 = vmatmul.mubr.msk.bf16.vlgmr.msra.gmra.mrb[12].mxu1 %vm470_vm4, %v595_v52 }
 0x425   :  { %2245 = vmatprep.subr.bf16.mxu0 %v2725_v0  ;;  %2265 = vmatprep.mubr.msk.bf16.mxu1 %vm2726_vm0, %v2725_v0 }
 0x427   :  { %2236 = vmatmul.mubr.msk.bf16.vlgmr.msra.gmra.mrb[8].mxu0 %vm245_vm3, %v414_v55 }
 0x428   :  { %2247 = vmatprep.mubr.msk.bf16.mxu0 %vm2726_vm0, %v2725_v0 }
 0x484   :  { %v511_v56 = vpop.f32.mrb[8].mxu1 }
 0x485   :  { %v518_v58 = vmul.f32 0.25, %v511_v56  ;;  %v2243_v59 = vpop.f32.mrb[9].mxu1 }
 0x486   :  { %v514_v60 = vpop.f32.mrb[10].mxu1 }
 0x487   :  { %v519_v62 = vmul.f32 0.25, %v514_v60  ;;  %v2244_v63 = vpop.f32.mrb[11].mxu1  ;;  %v520_v1 = vadd.f32 %v518_v58, %v2987_v57 }
 0x489   :  { %v522_v2 = vsel %vm470_vm4, %v520_v1, -inf  ;;  %v521_v3 = vadd.f32 %v519_v62, %v2989_v61 }
 0x48a   :  { %523 = vmax.xlane.f32.xlu1 %v522_v2 }
 0x48b   :  { %v525_v4 = vsel %vm470_vm4, %v521_v3, -inf }
 0x48c   :  { %526 = vmax.xlane.f32.xlu0 %v525_v4 }
 0x4f7   :  { %v639_v5 = vpop.f32.mrb[12].mxu1 }
 0x4f8   :  { %v646_v6 = vmul.f32 0.25, %v639_v5  ;;  %v2255_v7 = vpop.f32.mrb[13].mxu1 }
 0x4f9   :  { %v642_v8 = vpop.f32.mrb[14].mxu1 }
 0x4fa   :  { %v647_v9 = vmul.f32 0.25, %v642_v8  ;;  %v461_v10 = vpop.f32.mrb[8].mxu0  ;;  %v2256_v11 = vpop.f32.mrb[15].mxu1  ;;  %v648_v12 = vadd.f32 %v646_v6, %v2987_v57 }
 0x4fb   :  { %v2237_v13 = vpop.f32.mrb[9].mxu0 }
 0x4fc   :  { %v464_v14 = vpop.f32.mrb[10].mxu0  ;;  %v650_v15 = vsel %vm470_vm4, %v648_v12, -inf  ;;  %v649_v16 = vadd.f32 %v647_v9, %v2989_v61 }
 0x4fd   :  { %v2238_v17 = vpop.f32.mrb[11].mxu0  ;;  %651 = vmax.xlane.f32.xlu0 %v650_v15 }
 0x4fe   :  { %v653_v20 = vsel %vm470_vm4, %v649_v16, -inf  ;;  %v2086_v17 = vld [vmem:[#allocation13 + $0x2] ss:$0 sm:$0xff] }
 0x4ff   :  { %654 = vmax.xlane.f32.xlu1 %v653_v20 }
 0x513   :  { %421 = vrot.lane.b32.xlu0 %v2954_v32, %s2719_s20 }
 0x517   :  { %v524_v22 = vpop.xlane.xlu1 %523  ;;  %722 = vrot.lane.b32.xlu0 %v2944_v21, %s2729_s14 }
 0x518   :  { %v528_v23 = vsub.f32 %v520_v1, %v524_v22 }
 0x519   :  { %v527_v24 = vpop.xlane.xlu0 %526 }
 0x51a   :  { %v530_v25 = vmul.f32 1.442695, %v528_v23  ;;  %v529_v26 = vsub.f32 %v521_v3, %v527_v24 }
 0x51b   :  { %774 = vrot.lane.b32.xlu0 %v2414_v45, %s2729_s14 }
 0x51c   :  { %2424 = vpow2.f32 %v530_v25  ;;  %v532_v27 = vmul.f32 1.442695, %v529_v26 }
 0x51e   :  { %2426 = vpow2.f32 %v532_v27 }
 0x526   :  { %v2425_v28 = vpop.eup %2424 }
 0x527   :  { %v534_v29 = vsel %vm470_vm4, %v2425_v28, 0.0 }
 0x528   :  { %v2427_v30 = vpop.eup %2426  ;;  %535 = vadd.xlane.f32.xlu1 %v534_v29 }
 0x529   :  { %v537_v31 = vsel %vm470_vm4, %v2427_v30, 0.0 }
 0x52c   :  { %538 = vadd.xlane.f32.xlu1 %v537_v31 }
 0x58a   :  { %v652_v32 = vpop.xlane.xlu0 %651 }
 0x58b   :  { %v656_v33 = vsub.f32 %v648_v12, %v652_v32 }
 0x58c   :  { %v655_v34 = vpop.xlane.xlu1 %654 }
 0x58d   :  { %v658_v35 = vmul.f32 1.442695, %v656_v33  ;;  %v657_v36 = vsub.f32 %v649_v16, %v655_v34 }
 0x58e   :  { %v422_v37 = vpop.permute.xlu0 %421 }
 0x58f   :  { %2428 = vpow2.f32 %v658_v35  ;;  %v660_v38 = vmul.f32 1.442695, %v657_v36  ;;  %v462_v39 = vadd.f32 %v461_v10, %v422_v37  ;;  %v465_v40 = vadd.f32 %v464_v14, %v422_v37 }
 0x591   :  { %2430 = vpow2.f32 %v660_v38  ;;  %v545_v41 = vpack.c.bf16 %v465_v40, %v462_v39 }
 0x592   :  { %v723_v48 = vpop.permute.xlu0 %722 }
 0x593   :  { %2246 = vmatpush3.bf16.msra.mxu0 %v545_v41  ;;  %2264 = vmatpush3.bf16.msra.mxu1 %v723_v48 }
 0x594   :  { %2257 = vmatprep.subr.bf16.mxu0 %v2725_v0  ;;  %2275 = vmatprep.subr.bf16.mxu1 %v2725_v0 }
 0x596   :  { %v775_v1 = vpop.permute.xlu0 %774 }
 0x599   :  { %v2429_v42 = vpop.eup %2428 }
 0x59a   :  { %v662_v43 = vsel %vm470_vm4, %v2429_v42, 0.0 }
 0x59b   :  { %v2431_v44 = vpop.eup %2430  ;;  %663 = vadd.xlane.f32.xlu1 %v662_v43 }
 0x59c   :  { %v665_v21 = vsel %vm470_vm4, %v2431_v44, 0.0 }
 0x59f   :  { %666 = vadd.xlane.f32.xlu1 %v665_v21 }
 0x5b0   :  { %674 = vrot.lane.b32.xlu1 %v545_v41, %s2728_s1  ;;  %v3031_v41 = vld [vmem:[#allocation11 + $0x4] ss:$8 sps:$4 sm:$0xff]  }
 0x5b5   :  { %v536_v46 = vpop.xlane.xlu1 %535 }
 0x5b6   :  { %2432 = vrcp.f32 %v536_v46 }
 0x5b9   :  { %v539_v47 = vpop.xlane.xlu1 %538 }
 0x5ba   :  { %2434 = vrcp.f32 %v539_v47 }
 0x5c0   :  { %v2433_v49 = vpop.eup %2432 }
 0x5c1   :  { %v542_v51 = vmul.f32 %v2433_v49, %v2425_v28  ;;  %v2087_v49 = vld [vmem:[#allocation13 + $0x3] ss:$0 sm:$0xff] }
 0x5c4   :  { %v2435_v50 = vpop.eup %2434 }
 0x5c5   :  { %v543_v52 = vmul.f32 %v2435_v50, %v2427_v30 }
 0x5c7   :  { %v544_v53 = vpack.c.bf16 %v543_v52, %v542_v51 }
 0x5c9   :  { %2248 = vmatmul.mubr.msk.bf16.vlgmr.msra.gmra.mrb[12].mxu0 %vm470_vm4, %v544_v53  ;;  %v2088_v53 = vld [vmem:[#allocation13 + $0x4] ss:$0 sm:$0xff] }
 0x5ca   :  { %2259 = vmatprep.mubr.msk.bf16.mxu0 %vm2726_vm0, %v2725_v0 }
 0x628   :  { %v664_v54 = vpop.xlane.xlu1 %663 }
 0x629   :  { %2436 = vrcp.f32 %v664_v54 }
 0x62c   :  { %v667_v55 = vpop.xlane.xlu1 %666 }
 0x62d   :  { %2438 = vrcp.f32 %v667_v55 }
 0x630   :  { %v675_v56 = vpop.permute.xlu1 %674 }
 0x631   :  { %2258 = vmatpush3.bf16.msra.mxu0 %v675_v56 }
 0x632   :  { %2269 = vmatprep.subr.bf16.mxu0 %v2725_v0 }
 0x633   :  { %v2437_v58 = vpop.eup %2436 }
 0x634   :  { %v670_v60 = vmul.f32 %v2437_v58, %v2429_v42 }
 0x637   :  { %v2439_v59 = vpop.eup %2438 }
 0x638   :  { %v671_v62 = vmul.f32 %v2439_v59, %v2431_v44 }
 0x63a   :  { %v672_v63 = vpack.c.bf16 %v671_v62, %v670_v60  ;;  %v2089_v62 = vld [vmem:[#allocation13 + $0x5] ss:$0 sm:$0xff] }
 0x63c   :  { %2260 = vmatmul.mubr.msk.bf16.vlgmr.msra.gmra.mrb[16].mxu0 %vm470_vm4, %v672_v63 }
 0x63d   :  { %2270 = vmatpush3.bf16.msra.mxu0 %v775_v1  ;;  %2271 = vmatprep.mubr.msk.bf16.mxu0 %vm2726_vm0, %v2725_v0 }
 0x63e   :  { %2283 = vmatprep.subr.bf16.mxu0 %v2725_v0 }
 0x69c   :  { %v583_v2 = vpop.f32.mrb[12].mxu0 }
 0x69d   :  { %v2249_v3 = vpop.f32.mrb[13].mxu0 }
 0x69e   :  { %v586_v4 = vpop.f32.mrb[14].mxu0 }
 0x69f   :  { %v592_v5 = vpack.c.bf16 %v586_v4, %v583_v2  ;;  %v2250_v6 = vpop.f32.mrb[15].mxu0 }
 0x6a1   :  { %2272 = vmatmul.mubr.msk.bf16.vlgmr.msra.gmra.mrb[20].mxu0 %vm470_vm4, %v592_v5 }
 0x6a2   :  { %2287 = vmatprep.mubr.msk.bf16.mxu0 %vm2726_vm0, %v2725_v0 }
 0x70f   :  { %v714_v7 = vpop.f32.mrb[16].mxu0 }
 0x710   :  { %v2261_v8 = vpop.f32.mrb[17].mxu0 }
 0x711   :  { %v717_v9 = vpop.f32.mrb[18].mxu0 }
 0x712   :  { %v721_v10 = vpack.c.bf16 %v717_v9, %v714_v7  ;;  %v2262_v11 = vpop.f32.mrb[19].mxu0  ;;  %v2093_v9 = vld [vmem:[#allocation13 + $0x6] ss:$0 sm:$0xff] }
 0x714   :  { %2266 = vmatmul.mubr.msk.bf16.vlgmr.msra.gmra.mrb[16].mxu1 %vm470_vm4, %v721_v10 }
 0x715   :  { %2279 = vmatprep.mubr.msk.bf16.mxu1 %vm2726_vm0, %v2725_v0  ;;  %2276 = vmatpush3.bf16.msra.mxu1 %v3031_v41 }
 0x716   :  { %2277 = vmatprep.subr.bf16.mxu1 %v2725_v0 }
 0x774   :  { %v814_v12 = vpop.f32.mrb[20].mxu0 }
 0x775   :  { %v2273_v13 = vpop.f32.mrb[21].mxu0 }
 0x776   :  { %v817_v14 = vpop.f32.mrb[22].mxu0 }
 0x777   :  { %v2274_v15 = vpop.f32.mrb[23].mxu0 }
 0x7e7   :  { %v762_v16 = vpop.f32.mrb[16].mxu1 }
 0x7e8   :  { %v815_v20 = vadd.f32 %v814_v12, %v762_v16  ;;  %v2267_v22 = vpop.f32.mrb[17].mxu1 }
 0x7e9   :  { %v765_v23 = vpop.f32.mrb[18].mxu1 }
 0x7ea   :  { %v826_v24 = vadd.f32 %v2086_v17, %v815_v20  ;;  %v818_v25 = vadd.f32 %v817_v14, %v765_v23  ;;  %v2268_v26 = vpop.f32.mrb[19].mxu1 }
 0x7ec   :  { %v827_v27 = vadd.f32 %v2086_v17, %v818_v25  ;;  %v828_v28 = vadd.f32 %v826_v24, %v2935_v18 }
 0x7ee   :  { %v832_v29 = vsel %vm245_vm3, %v828_v28, 0.0  ;;  %v829_v30 = vadd.f32 %v827_v27, %v2937_v19  ;;  %v3037_v19 = vld [vmem:[#allocation11 + $0x14] ss:$8 sps:$4 sm:$0xff]  }
 0x7ef   :  { %833 = vadd.xlane.f32.xlu0 %v832_v29  ;;  %2278 = vmatpush3.bf16.msra.mxu1 %v3037_v19 }
 0x7f0   :  { %v835_v31 = vsel %vm245_vm3, %v829_v30, 0.0  ;;  %2291 = vmatprep.subr.bf16.mxu1 %v2725_v0 }
 0x7f1   :  { %836 = vadd.xlane.f32.xlu1 %v835_v31 }
 0x802   :  { %947 = vrot.lane.b32.xlu1 %v3037_v19, %s2727_s9 }
 0x87c   :  { %v834_v32 = vpop.xlane.xlu0 %833 }
 0x87d   :  { %v839_v33 = vmul.f32 0.03125, %v834_v32 }
 0x87e   :  { %v837_v34 = vpop.xlane.xlu1 %836 }
 0x87f   :  { %v841_v35 = vsub.f32 %v828_v28, %v839_v33  ;;  %v840_v36 = vmul.f32 0.03125, %v837_v34 }
 0x881   :  { %v842_v37 = vsub.f32 %v829_v30, %v840_v36  ;;  %v843_v38 = vmul.f32 %v841_v35, %v841_v35 }
 0x882   :  { %v948_v60 = vpop.permute.xlu1 %947 }
 0x883   :  { %v845_v39 = vsel %vm245_vm3, %v843_v38, 0.0  ;;  %v844_v40 = vmul.f32 %v842_v37, %v842_v37 }
 0x884   :  { %846 = vadd.xlane.f32.xlu0 %v845_v39 }
 0x885   :  { %v848_v18 = vsel %vm245_vm3, %v844_v40, 0.0 }
 0x888   :  { %849 = vadd.xlane.f32.xlu0 %v848_v18 }
 0x89e   :  { %945 = vrot.lane.b32.xlu0 %v3031_v41, %s2727_s9 }
 0x911   :  { %v847_v42 = vpop.xlane.xlu0 %846 }
 0x912   :  { %v851_v43 = vmul.f32 0.03125, %v847_v42 }
 0x914   :  { %v853_v44 = vadd.f32 1e-05, %v851_v43 }
 0x915   :  { %v850_v21 = vpop.xlane.xlu0 %849 }
 0x916   :  { %2440 = vrsqrt.f32 %v853_v44  ;;  %v852_v45 = vmul.f32 0.03125, %v850_v21  ;;  %v2096_v21 = vld [vmem:[#allocation13 + $0x8] ss:$0 sm:$0xff] }
 0x918   :  { %v854_v46 = vadd.f32 1e-05, %v852_v45 }
 0x919   :  { %v946_v59 = vpop.permute.xlu0 %945 }
 0x91a   :  { %2442 = vrsqrt.f32 %v854_v46  ;;  %2284 = vmatpush3.bf16.msra.mxu0 %v946_v59 }
 0x91b   :  { %2285 = vmatprep.subr.bf16.mxu0 %v2725_v0 }
 0x91e   :  { %2286 = vmatpush3.bf16.msra.mxu0 %v948_v60 }
 0x91f   :  { %2299 = vmatprep.subr.bf16.mxu0 %v2725_v0 }
 0x920   :  { %v2441_v47 = vpop.eup %2440 }
 0x921   :  { %v857_v48 = vmul.f32 %v2441_v47, %v841_v35 }
 0x923   :  { %v863_v51 = vmul.f32 %v2087_v49, %v857_v48 }
 0x924   :  { %v2443_v50 = vpop.eup %2442 }
 0x925   :  { %v858_v52 = vmul.f32 %v2443_v50, %v842_v37  ;;  %v869_v55 = vadd.f32 %v2088_v53, %v863_v51 }
 0x927   :  { %v864_v54 = vmul.f32 %v2087_v49, %v858_v52  ;;  %v2097_v49 = vld [vmem:[#allocation13 + $0x9] ss:$0 sm:$0xff] }
 0x929   :  { %v870_v56 = vadd.f32 %v2088_v53, %v864_v54 }
 0x92b   :  { %v875_v58 = vpack.c.bf16 %v870_v56, %v869_v55 }
 0x92d   :  { %2280 = vmatmul.mubr.msk.bf16.vlgmr.msra.gmra.mrb[20].mxu1 %vm245_vm3, %v875_v58 }
 0x92e   :  { %2295 = vmatprep.mubr.msk.bf16.mxu1 %vm2726_vm0, %v2725_v0 }
 0xa00   :  { %v930_v63 = vpop.f32.mrb[20].mxu1 }
 0xa01   :  { %v931_v1 = vadd.f32 %v2089_v62, %v930_v63  ;;  %v2281_v2 = vpop.f32.mrb[21].mxu1 }
 0xa02   :  { %v933_v3 = vpop.f32.mrb[22].mxu1 }
 0xa03   :  { %v934_v4 = vadd.f32 %v2089_v62, %v933_v3  ;;  %v2282_v5 = vpop.f32.mrb[23].mxu1  ;;  %v937_v6 = vmax.f32 %v931_v1, 0.0 }
 0xa05   :  { %v938_v7 = vmax.f32 %v934_v4, 0.0 }
 0xa07   :  { %v939_v8 = vpack.c.bf16 %v938_v7, %v937_v6  ;;  %v2417_v7 = vld [vmem:[#allocation14] sm:$0xff]  }
 0xa09   :  { %2288 = vmatmul.mubr.msk.bf16.vlgmr.msra.gmra.mrb[24].mxu0 %vm245_vm3, %v939_v8  ;;  %v2418_v8 = vld [vmem:[#allocation14 + $0x8] sm:$0xff]  }
 0xa0a   :  { %2303 = vmatprep.mubr.msk.bf16.mxu0 %vm2726_vm0, %v2725_v0  ;;  %2300 = vmatpush3.bf16.msra.mxu0 %v2417_v7 }
 0xa0b   :  { %2301 = vmatprep.subr.bf16.mxu0 %v2725_v0 }
 0xa0e   :  { %2302 = vmatpush3.bf16.msra.mxu0 %v2418_v8 }
 0xa0f   :  { %2315 = vmatprep.subr.bf16.mxu0 %v2725_v0 }
 0xadc   :  { %v988_v10 = vpop.f32.mrb[24].mxu0 }
 0xadd   :  { %v989_v11 = vadd.f32 %v2093_v9, %v988_v10  ;;  %v2289_v12 = vpop.f32.mrb[25].mxu0 }
 0xade   :  { %v991_v13 = vpop.f32.mrb[26].mxu0 }
 0xadf   :  { %v992_v14 = vadd.f32 %v2093_v9, %v991_v13  ;;  %v2290_v15 = vpop.f32.mrb[27].mxu0  ;;  %v995_v16 = vadd.f32 %v989_v11, %v869_v55  ;;  %v3073_v9 = vld [vmem:[%s3239_s8] ss:$8 sps:$4 sm:$0xff]  }
 0xae1   :  { %v999_v17 = vsel %vm245_vm3, %v995_v16, 0.0  ;;  %v996_v20 = vadd.f32 %v992_v14, %v870_v56 }
 0xae2   :  { %1000 = vadd.xlane.f32.xlu1 %v999_v17  ;;  %v2099_v17 = vld [vmem:[#allocation13 + $0xa] ss:$0 sm:$0xff] }
 0xae3   :  { %v1002_v22 = vsel %vm245_vm3, %v996_v20, 0.0 }
 0xae4   :  { %1003 = vadd.xlane.f32.xlu0 %v1002_v22 }
 0xb6f   :  { %v1001_v23 = vpop.xlane.xlu1 %1000 }
 0xb70   :  { %v1005_v24 = vmul.f32 0.03125, %v1001_v23  ;;  %v2100_v23 = vld [vmem:[#allocation13 + $0xb] ss:$0 sm:$0xff] }
 0xb71   :  { %v1004_v25 = vpop.xlane.xlu0 %1003 }
 0xb72   :  { %v1007_v26 = vsub.f32 %v995_v16, %v1005_v24  ;;  %v1006_v27 = vmul.f32 0.03125, %v1004_v25 }
 0xb74   :  { %v1008_v28 = vsub.f32 %v996_v20, %v1006_v27  ;;  %v1009_v29 = vmul.f32 %v1007_v26, %v1007_v26 }
 0xb76   :  { %v1011_v30 = vsel %vm245_vm3, %v1009_v29, 0.0  ;;  %v1010_v31 = vmul.f32 %v1008_v28, %v1008_v28 }
 0xb77   :  { %1012 = vadd.xlane.f32.xlu0 %v1011_v30 }
 0xb78   :  { %v1014_v32 = vsel %vm245_vm3, %v1010_v31, 0.0 }
 0xb79   :  { %1015 = vadd.xlane.f32.xlu1 %v1014_v32  ;;  %v3085_v32 = vld [vmem:[%s3239_s8 + $0x10] ss:$8 sps:$4 sm:$0xff]  }
 0xb8a   :  { %1045 = vrot.lane.b32.xlu1 %v3037_v19, %s2719_s20  ;;  %v2095_v19 = vld [vmem:[#allocation13 + $0x7] ss:$0 sm:$0xff] }
 0xb8d   :  { %1043 = vrot.lane.b32.xlu0 %v3031_v41, %s2719_s20 }
 0xc04   :  { %v1013_v33 = vpop.xlane.xlu0 %1012 }
 0xc05   :  { %v1017_v34 = vmul.f32 0.03125, %v1013_v33 }
 0xc06   :  { %v1016_v35 = vpop.xlane.xlu1 %1015 }
 0xc07   :  { %v1019_v36 = vadd.f32 1e-05, %v1017_v34  ;;  %v1018_v37 = vmul.f32 0.03125, %v1016_v35  ;;  %v3093_v35 = vld [vmem:[#allocation16 + $0x1] ss:$0 sm:$0xff] }
 0xc08   :  { %v1044_v38 = vpop.permute.xlu0 %1043 }
 0xc09   :  { %2444 = vrsqrt.f32 %v1019_v36  ;;  %v1020_v39 = vadd.f32 1e-05, %v1018_v37  ;;  %2292 = vmatpush3.bf16.msra.mxu1 %v1044_v38  ;;  %v2101_v36 = vld [vmem:[#allocation16] ss:$0 sm:$0xff] }
 0xc0a   :  { %v1046_v40 = vpop.permute.xlu1 %1045  ;;  %2293 = vmatprep.subr.bf16.mxu1 %v2725_v0 }
 0xc0b   :  { %2446 = vrsqrt.f32 %v1020_v39 }
 0xc0d   :  { %2294 = vmatpush3.bf16.msra.mxu1 %v1046_v40 }
 0xc0e   :  { %2307 = vmatprep.subr.bf16.mxu1 %v2725_v0 }
 0xc13   :  { %v2445_v18 = vpop.eup %2444 }
 0xc14   :  { %v1023_v42 = vmul.f32 %v2445_v18, %v1007_v26 }
 0xc15   :  { %v2447_v41 = vpop.eup %2446 }
 0xc16   :  { %v1029_v43 = vmul.f32 %v2095_v19, %v1023_v42  ;;  %v1024_v44 = vmul.f32 %v2447_v41, %v1008_v28 }
 0xc18   :  { %v1030_v45 = vmul.f32 %v2095_v19, %v1024_v44  ;;  %v1035_v46 = vadd.f32 %v2096_v21, %v1029_v43 }
 0xc1a   :  { %v1036_v47 = vadd.f32 %v2096_v21, %v1030_v45 }
 0xc1c   :  { %v1037_v48 = vpack.c.bf16 %v1036_v47, %v1035_v46 }
 0xc1e   :  { %2296 = vmatmul.mubr.msk.bf16.vlgmr.msra.gmra.mrb[24].mxu1 %vm245_vm3, %v1037_v48 }
 0xc1f   :  { %2311 = vmatprep.mubr.msk.bf16.mxu1 %vm2726_vm0, %v2725_v0  ;;  %2308 = vmatpush3.bf16.msra.mxu1 %v3073_v9 }
 0xc20   :  { %2309 = vmatprep.subr.bf16.mxu1 %v2725_v0 }
 0xc23   :  { %2310 = vmatpush3.bf16.msra.mxu1 %v3085_v32 }
 0xc24   :  { %2323 = vmatprep.subr.bf16.mxu1 %v2725_v0 }
 0xcf1   :  { %v1086_v50 = vpop.f32.mrb[24].mxu1 }
 0xcf2   :  { %v1087_v51 = vadd.f32 %v2097_v49, %v1086_v50  ;;  %v2297_v52 = vpop.f32.mrb[25].mxu1 }
 0xcf3   :  { %v1089_v53 = vpop.f32.mrb[26].mxu1 }
 0xcf4   :  { %v1090_v54 = vadd.f32 %v2097_v49, %v1089_v53  ;;  %v2298_v55 = vpop.f32.mrb[27].mxu1  ;;  %v1095_v56 = vsel %vm245_vm3, %v1087_v51, 0.0 }
 0xcf5   :  { %1096 = vadd.xlane.f32.xlu1 %v1095_v56 }
 0xcf6   :  { %v1098_v58 = vsel %vm245_vm3, %v1090_v54, 0.0 }
 0xcf7   :  { %1099 = vadd.xlane.f32.xlu0 %v1098_v58 }
 0xd82   :  { %v1097_v59 = vpop.xlane.xlu1 %1096 }
 0xd83   :  { %v1101_v60 = vmul.f32 0.03125, %v1097_v59 }
 0xd84   :  { %v1100_v62 = vpop.xlane.xlu0 %1099 }
 0xd85   :  { %v1103_v63 = vsub.f32 %v1087_v51, %v1101_v60  ;;  %v1102_v1 = vmul.f32 0.03125, %v1100_v62 }
 0xd87   :  { %v1104_v2 = vsub.f32 %v1090_v54, %v1102_v1  ;;  %v1105_v3 = vmul.f32 %v1103_v63, %v1103_v63 }
 0xd89   :  { %v1107_v4 = vsel %vm245_vm3, %v1105_v3, 0.0  ;;  %v1106_v5 = vmul.f32 %v1104_v2, %v1104_v2 }
 0xd8a   :  { %1108 = vadd.xlane.f32.xlu0 %v1107_v4 }
 0xd8b   :  { %v1110_v6 = vsel %vm245_vm3, %v1106_v5, 0.0 }
 0xd8c   :  { %1111 = vadd.xlane.f32.xlu1 %v1110_v6 }
 0xd9d   :  { %1272 = vrot.lane.b32.xlu1 %v3085_v32, %s2727_s9 }
 0xda0   :  { %1270 = vrot.lane.b32.xlu0 %v3073_v9, %s2727_s9 }
 0xda4   :  { %1277 = vrot.lane.b32.xlu0 %v3093_v35, %s2727_s9 }
 0xe17   :  { %v1109_v10 = vpop.xlane.xlu0 %1108 }
 0xe18   :  { %v1113_v11 = vmul.f32 0.03125, %v1109_v10 }
 0xe19   :  { %v1112_v12 = vpop.xlane.xlu1 %1111 }
 0xe1a   :  { %v1115_v13 = vadd.f32 1e-05, %v1113_v11  ;;  %v1114_v14 = vmul.f32 0.03125, %v1112_v12 }
 0xe1b   :  { %v1271_v33 = vpop.permute.xlu0 %1270 }
 0xe1c   :  { %2448 = vrsqrt.f32 %v1115_v13  ;;  %v1116_v15 = vadd.f32 1e-05, %v1114_v14 }
 0xe1d   :  { %v1273_v34 = vpop.permute.xlu1 %1272 }
 0xe1e   :  { %2450 = vrsqrt.f32 %v1116_v15 }
 0xe1f   :  { %v1278_v50 = vpop.permute.xlu0 %1277 }
 0xe26   :  { %v2449_v16 = vpop.eup %2448 }
 0xe27   :  { %v1119_v20 = vmul.f32 %v2449_v16, %v1103_v63 }
 0xe28   :  { %v2451_v22 = vpop.eup %2450 }
 0xe29   :  { %v1125_v24 = vmul.f32 %v2099_v17, %v1119_v20  ;;  %v1120_v25 = vmul.f32 %v2451_v22, %v1104_v2 }
 0xe2b   :  { %v1126_v26 = vmul.f32 %v2099_v17, %v1120_v25  ;;  %v1131_v27 = vadd.f32 %v2100_v23, %v1125_v24 }
 0xe2d   :  { %v1132_v28 = vadd.f32 %v2100_v23, %v1126_v26  ;;  %v1133_v29 = vmax.f32 %v1131_v27, 0.0 }
 0xe2f   :  { %v1134_v30 = vmax.f32 %v1132_v28, 0.0 }
 0xe31   :  { %v1139_v31 = vpack.c.bf16 %v1134_v30, %v1133_v29 }
 0xe33   :  { %2304 = vmatmul.mubr.msk.bf16.vlgmr.msra.gmra.mrb[28].mxu0 %vm245_vm3, %v1139_v31 }
 0xe34   :  { %2319 = vmatprep.mubr.msk.bf16.mxu0 %vm2726_vm0, %v2725_v0  ;;  %2316 = vmatpush3.bf16.msra.mxu0 %v1271_v33 }
 0xe35   :  { %2317 = vmatprep.subr.bf16.mxu0 %v2725_v0 }
 0xe38   :  { %2318 = vmatpush3.bf16.msra.mxu0 %v1273_v34 }
 0xe39   :  { %2331 = vmatprep.subr.bf16.mxu0 %v2725_v0 }
 0xf06   :  { %v1194_v37 = vpop.f32.mrb[28].mxu0 }
 0xf07   :  { %v2305_v38 = vpop.f32.mrb[29].mxu0  ;;  %v3097_v40 = vadd.f32 %v2101_v36, %v1194_v37 }
 0xf08   :  { %v1197_v39 = vpop.f32.mrb[30].mxu0 }
 0xf09   :  { %v3099_v18 = vadd.f32 %v2101_v36, %v1197_v39  ;;  %v2306_v19 = vpop.f32.mrb[31].mxu0 }
 0xf0b   :  { %v1206_v42 = vpack.c.bf16 %v3099_v18, %v3097_v40 }
 0xf0d   :  { %1268 = vrot.lane.b32.xlu1 %v1206_v42, %s2727_s9  ;;  %2312 = vmatmul.mubr.msk.bf16.vlgmr.msra.gmra.mrb[28].mxu1 %vm245_vm3, %v1206_v42 }
 0xf0e   :  { %2327 = vmatprep.mubr.msk.bf16.mxu1 %vm2726_vm0, %v2725_v0 }
 0xf7f   :  { %v1269_v41 = vpop.permute.xlu1 %1268 }
 0xf80   :  { %2320 = vmatmul.mubr.msk.bf16.vlgmr.msra.gmra.mrb[32].mxu0 %vm245_vm3, %v1269_v41 }
 0xf81   :  { %2333 = vmatprep.mubr.msk.bf16.mxu0 %vm2726_vm0, %v2725_v0 }
 0xfe0   :  { %v1260_v43 = vpop.f32.mrb[28].mxu1 }
 0xfe1   :  { %v2313_v44 = vpop.f32.mrb[29].mxu1  ;;  %v1261_v45 = vadd.f32 %v3093_v35, %v1260_v43 }
 0xfe2   :  { %v1263_v21 = vpop.f32.mrb[30].mxu1 }
 0xfe3   :  { %v1264_v46 = vadd.f32 %v3093_v35, %v1263_v21  ;;  %v2314_v47 = vpop.f32.mrb[31].mxu1 }
 0xfe5   :  { %v1379_v48 = vpack.c.bf16 %v1264_v46, %v1261_v45 }
 0xfe7   :  { %1504 = vrot.lane.b32.xlu0 %v1379_v48, %s2728_s1 }
 0xfeb   :  { %1328 = vrot.lane.b32.xlu0 %v3085_v32, %s2719_s20 }
0x1053   :  { %v1317_v49 = vpop.f32.mrb[32].mxu0 }
0x1054   :  { %v2321_v51 = vpop.f32.mrb[33].mxu0  ;;  %v1318_v53 = vadd.f32 %v1317_v49, %v1278_v50 }
0x1055   :  { %v1320_v52 = vpop.f32.mrb[34].mxu0 }
0x1056   :  { %v1321_v54 = vadd.f32 %v1320_v52, %v1278_v50  ;;  %v2322_v55 = vpop.f32.mrb[35].mxu0  ;;  %v2421_v52 = vld [vmem:[%s3239_s8] ss:$8 sps:$4 sm:$0xff]  }
0x1058   :  { %v1380_v56 = vpack.c.bf16 %v1321_v54, %v1318_v53 }
0x1059   :  { %v1505_v62 = vpop.permute.xlu0 %1504 }
0x105a   :  { %1507 = vrot.lane.b32.xlu1 %v1380_v56, %s2728_s1  ;;  %v1385_v58 = vsel %vm470_vm4, %v1380_v56, 0 }
0x105b   :  { %2332 = vmatpush3.bf16.xpose.msra.mxu0 %v1385_v58 }
0x105c   :  { %2343 = vmatprep.subr.bf16.mxu0 %v2725_v0 }
0x105d   :  { %v1329_v1 = vpop.permute.xlu0 %1328 }
0x105e   :  { %1326 = vrot.lane.b32.xlu1 %v3073_v9, %s2719_s20 }
0x1062   :  { %1324 = vrot.lane.b32.xlu1 %v1206_v42, %s2719_s20  ;;  %2334 = vmatmul.mubr.msk.bf16.vlgmr.msra.gmra.mrb[36].mxu0 %vm470_vm4, %v1379_v48 }
0x1063   :  { %2345 = vmatprep.mubr.msk.bf16.mxu0 %vm2726_vm0, %v2725_v0 }
0x10cc   :  { %v1508_v59 = vpop.permute.xlu1 %1507 }
0x10cd   :  { %v1513_v60 = vsel %vm470_vm4, %v1508_v59, 0 }
0x10ce   :  { %2344 = vmatpush3.bf16.xpose.msra.mxu0 %v1513_v60 }
0x10cf   :  { %2355 = vmatprep.subr.bf16.mxu0 %v2725_v0 }
0x10d0   :  { %v1327_v63 = vpop.permute.xlu1 %1326 }
0x10d1   :  { %2324 = vmatpush3.bf16.msra.mxu1 %v1327_v63 }
0x10d2   :  { %2325 = vmatprep.subr.bf16.mxu1 %v2725_v0 }
0x10d4   :  { %v1325_v2 = vpop.permute.xlu1 %1324 }
0x10d5   :  { %2326 = vmatpush3.bf16.msra.mxu1 %v1329_v1  ;;  %2346 = vmatmul.mubr.msk.bf16.vlgmr.msra.gmra.mrb[40].mxu0 %vm470_vm4, %v1505_v62 }
0x10d6   :  { %2337 = vmatprep.subr.bf16.mxu1 %v2725_v0  ;;  %2357 = vmatprep.mubr.msk.bf16.mxu0 %vm2726_vm0, %v2725_v0 }
0x10d8   :  { %2328 = vmatmul.mubr.msk.bf16.vlgmr.msra.gmra.mrb[32].mxu1 %vm245_vm3, %v1325_v2 }
0x10d9   :  { %2339 = vmatprep.mubr.msk.bf16.mxu1 %vm2726_vm0, %v2725_v0 }
0x1135   :  { %v1421_v3 = vpop.f32.mrb[36].mxu0 }
0x1136   :  { %v1428_v4 = vmul.f32 0.25, %v1421_v3  ;;  %v2335_v5 = vpop.f32.mrb[37].mxu0 }
0x1137   :  { %v1424_v6 = vpop.f32.mrb[38].mxu0 }
0x1138   :  { %v1429_v7 = vmul.f32 0.25, %v1424_v6  ;;  %v2336_v8 = vpop.f32.mrb[39].mxu0  ;;  %v1430_v9 = vadd.f32 %v1428_v4, %v2987_v57 }
0x113a   :  { %v1432_v10 = vsel %vm470_vm4, %v1430_v9, -inf  ;;  %v1431_v11 = vadd.f32 %v1429_v7, %v2989_v61 }
0x113b   :  { %1433 = vmax.xlane.f32.xlu0 %v1432_v10 }
0x113c   :  { %v1435_v12 = vsel %vm470_vm4, %v1431_v11, -inf }
0x113d   :  { %1436 = vmax.xlane.f32.xlu1 %v1435_v12 }
0x114e   :  { %1332 = vrot.lane.b32.xlu1 %v3093_v35, %s2719_s20 }
0x11a8   :  { %v1549_v13 = vpop.f32.mrb[40].mxu0 }
0x11a9   :  { %v1556_v14 = vmul.f32 0.25, %v1549_v13  ;;  %v2347_v15 = vpop.f32.mrb[41].mxu0 }
0x11aa   :  { %v1552_v16 = vpop.f32.mrb[42].mxu0 }
0x11ab   :  { %v1557_v17 = vmul.f32 0.25, %v1552_v16  ;;  %v1372_v20 = vpop.f32.mrb[32].mxu1  ;;  %v2348_v22 = vpop.f32.mrb[43].mxu0  ;;  %v1558_v23 = vadd.f32 %v1556_v14, %v2987_v57 }
0x11ac   :  { %v2329_v24 = vpop.f32.mrb[33].mxu1 }
0x11ad   :  { %v1375_v25 = vpop.f32.mrb[34].mxu1  ;;  %v1560_v26 = vsel %vm470_vm4, %v1558_v23, -inf  ;;  %v1559_v27 = vadd.f32 %v1557_v17, %v2989_v61 }
0x11ae   :  { %1561 = vmax.xlane.f32.xlu0 %v1560_v26  ;;  %v2330_v28 = vpop.f32.mrb[35].mxu1  ;;  %v2118_v26 = vld [vmem:[#allocation16 + $0x2] ss:$0 sm:$0xff] }
0x11af   :  { %v1563_v29 = vsel %vm470_vm4, %v1559_v27, -inf }
0x11b2   :  { %1564 = vmax.xlane.f32.xlu0 %v1563_v29 }
0x11c8   :  { %v1434_v30 = vpop.xlane.xlu0 %1433 }
0x11c9   :  { %v1438_v31 = vsub.f32 %v1430_v9, %v1434_v30 }
0x11ca   :  { %v1437_v33 = vpop.xlane.xlu1 %1436 }
0x11cb   :  { %v1440_v34 = vmul.f32 1.442695, %v1438_v31  ;;  %v1439_v35 = vsub.f32 %v1431_v11, %v1437_v33 }
0x11cd   :  { %2452 = vpow2.f32 %v1440_v34  ;;  %v1442_v36 = vmul.f32 1.442695, %v1439_v35 }
0x11ce   :  { %v1333_v37 = vpop.permute.xlu1 %1332 }
0x11cf   :  { %2454 = vpow2.f32 %v1442_v36  ;;  %v1373_v57 = vadd.f32 %v1372_v20, %v1333_v37  ;;  %v1376_v38 = vadd.f32 %v1375_v25, %v1333_v37 }
0x11d1   :  { %v1455_v39 = vpack.c.bf16 %v1376_v38, %v1373_v57 }
0x11d3   :  { %1584 = vrot.lane.b32.xlu1 %v1455_v39, %s2728_s1  ;;  %2338 = vmatpush3.bf16.msra.mxu1 %v1455_v39 }
0x11d4   :  { %2349 = vmatprep.subr.bf16.mxu1 %v2725_v0 }
0x11d7   :  { %v2453_v61 = vpop.eup %2452  ;;  %1684 = vrot.lane.b32.xlu1 %v2421_v52, %s2729_s14 }
0x11d8   :  { %v1444_v19 = vsel %vm470_vm4, %v2453_v61, 0.0 }
0x11d9   :  { %v2455_v42 = vpop.eup %2454  ;;  %1445 = vadd.xlane.f32.xlu0 %v1444_v19 }
0x11da   :  { %v1447_v41 = vsel %vm470_vm4, %v2455_v42, 0.0 }
0x11dd   :  { %1448 = vadd.xlane.f32.xlu0 %v1447_v41 }
0x123b   :  { %v1562_v43 = vpop.xlane.xlu0 %1561 }
0x123c   :  { %v1566_v44 = vsub.f32 %v1558_v23, %v1562_v43 }
0x123e   :  { %v1568_v21 = vmul.f32 1.442695, %v1566_v44 }
0x123f   :  { %v1565_v45 = vpop.xlane.xlu0 %1564 }
0x1240   :  { %2456 = vpow2.f32 %v1568_v21  ;;  %v1567_v46 = vsub.f32 %v1559_v27, %v1565_v45  ;;  %v3186_v45 = vld [vmem:[%s3239_s8 + $0x14] ss:$8 sps:$4 sm:$0xff]  }
0x1242   :  { %v1570_v47 = vmul.f32 1.442695, %v1567_v46 }
0x1244   :  { %2458 = vpow2.f32 %v1570_v47 }
0x1245   :  { %v1585_v62 = vpop.permute.xlu1 %1584 }
0x1249   :  { %v1685_v7 = vpop.permute.xlu1 %1684 }
0x124a   :  { %v2457_v48 = vpop.eup %2456 }
0x124b   :  { %v1572_v49 = vsel %vm470_vm4, %v2457_v48, 0.0 }
0x124c   :  { %1573 = vadd.xlane.f32.xlu0 %v1572_v49 }
0x124e   :  { %v2459_v50 = vpop.eup %2458 }
0x124f   :  { %v1575_v51 = vsel %vm470_vm4, %v2459_v50, 0.0 }
0x1250   :  { %1576 = vadd.xlane.f32.xlu0 %v1575_v51 }
0x1266   :  { %v1446_v53 = vpop.xlane.xlu0 %1445  ;;  %1632 = vrot.lane.b32.xlu0 %v3085_v32, %s2729_s14 }
0x1267   :  { %2460 = vrcp.f32 %v1446_v53 }
0x126a   :  { %v1449_v54 = vpop.xlane.xlu0 %1448 }
0x126b   :  { %2462 = vrcp.f32 %v1449_v54  ;;  %v2119_v54 = vld [vmem:[#allocation16 + $0x3] ss:$0 sm:$0xff] }
0x1271   :  { %v2461_v55 = vpop.eup %2460 }
0x1272   :  { %v1452_v58 = vmul.f32 %v2461_v55, %v2453_v61 }
0x1275   :  { %v2463_v56 = vpop.eup %2462 }
0x1276   :  { %v1453_v59 = vmul.f32 %v2463_v56, %v2455_v42 }
0x1278   :  { %v1454_v60 = vpack.c.bf16 %v1453_v59, %v1452_v58  ;;  %v2120_v59 = vld [vmem:[#allocation16 + $0x4] ss:$0 sm:$0xff] }
0x127a   :  { %2340 = vmatmul.mubr.msk.bf16.vlgmr.msra.gmra.mrb[36].mxu1 %vm470_vm4, %v1454_v60 }
0x127b   :  { %2350 = vmatpush3.bf16.msra.mxu1 %v1585_v62  ;;  %2351 = vmatprep.mubr.msk.bf16.mxu1 %vm2726_vm0, %v2725_v0 }
0x127c   :  { %2361 = vmatprep.subr.bf16.mxu1 %v2725_v0 }
0x12d9   :  { %v1574_v63 = vpop.xlane.xlu0 %1573 }
0x12da   :  { %2464 = vrcp.f32 %v1574_v63 }
0x12dd   :  { %v1577_v32 = vpop.xlane.xlu0 %1576 }
0x12de   :  { %2466 = vrcp.f32 %v1577_v32 }
0x12e1   :  { %v1633_v1 = vpop.permute.xlu0 %1632 }
0x12e2   :  { %2356 = vmatpush3.bf16.msra.mxu0 %v1633_v1 }
0x12e3   :  { %2367 = vmatprep.subr.bf16.mxu0 %v2725_v0 }
0x12e4   :  { %v2465_v2 = vpop.eup %2464 }
0x12e5   :  { %v1580_v4 = vmul.f32 %v2465_v2, %v2457_v48 }
0x12e8   :  { %v2467_v3 = vpop.eup %2466 }
0x12e9   :  { %v1581_v5 = vmul.f32 %v2467_v3, %v2459_v50  ;;  %v2121_v3 = vld [vmem:[#allocation16 + $0x5] ss:$0 sm:$0xff] }
0x12eb   :  { %v1582_v6 = vpack.c.bf16 %v1581_v5, %v1580_v4 }
0x12ed   :  { %2352 = vmatmul.mubr.msk.bf16.vlgmr.msra.gmra.mrb[40].mxu1 %vm470_vm4, %v1582_v6 }
0x12ee   :  { %2362 = vmatpush3.bf16.msra.mxu1 %v1685_v7  ;;  %2363 = vmatprep.mubr.msk.bf16.mxu1 %vm2726_vm0, %v2725_v0 }
0x12ef   :  { %2375 = vmatprep.subr.bf16.mxu1 %v2725_v0 }
0x134d   :  { %v1493_v8 = vpop.f32.mrb[36].mxu1 }
0x134e   :  { %v2341_v9 = vpop.f32.mrb[37].mxu1 }
0x134f   :  { %v1496_v10 = vpop.f32.mrb[38].mxu1 }
0x1350   :  { %v1502_v11 = vpack.c.bf16 %v1496_v10, %v1493_v8  ;;  %v2342_v12 = vpop.f32.mrb[39].mxu1 }
0x1352   :  { %2364 = vmatmul.mubr.msk.bf16.vlgmr.msra.gmra.mrb[44].mxu1 %vm470_vm4, %v1502_v11 }
0x1353   :  { %2379 = vmatprep.mubr.msk.bf16.mxu1 %vm2726_vm0, %v2725_v0 }
0x13c0   :  { %v1624_v13 = vpop.f32.mrb[40].mxu1 }
0x13c1   :  { %v2353_v14 = vpop.f32.mrb[41].mxu1 }
0x13c2   :  { %v1627_v15 = vpop.f32.mrb[42].mxu1 }
0x13c3   :  { %v1631_v16 = vpack.c.bf16 %v1627_v15, %v1624_v13  ;;  %v2354_v17 = vpop.f32.mrb[43].mxu1  ;;  %v2125_v13 = vld [vmem:[#allocation16 + $0x6] ss:$0 sm:$0xff] }
0x13c5   :  { %2358 = vmatmul.mubr.msk.bf16.vlgmr.msra.gmra.mrb[44].mxu0 %vm470_vm4, %v1631_v16 }
0x13c6   :  { %2371 = vmatprep.mubr.msk.bf16.mxu0 %vm2726_vm0, %v2725_v0 }
0x1425   :  { %v1724_v20 = vpop.f32.mrb[44].mxu1 }
0x1426   :  { %v2365_v22 = vpop.f32.mrb[45].mxu1 }
0x1427   :  { %v1727_v23 = vpop.f32.mrb[46].mxu1 }
0x1428   :  { %v2366_v24 = vpop.f32.mrb[47].mxu1 }
0x1498   :  { %v1672_v25 = vpop.f32.mrb[44].mxu0 }
0x1499   :  { %v1725_v27 = vadd.f32 %v1724_v20, %v1672_v25  ;;  %v2359_v28 = vpop.f32.mrb[45].mxu0 }
0x149a   :  { %v1675_v29 = vpop.f32.mrb[46].mxu0 }
0x149b   :  { %v1736_v30 = vadd.f32 %v2118_v26, %v1725_v27  ;;  %v1728_v31 = vadd.f32 %v1727_v23, %v1675_v29  ;;  %v2360_v33 = vpop.f32.mrb[47].mxu0 }
0x149d   :  { %v1737_v34 = vadd.f32 %v2118_v26, %v1728_v31  ;;  %v1738_v35 = vadd.f32 %v1736_v30, %v3097_v40 }
0x149f   :  { %v1742_v36 = vsel %vm245_vm3, %v1738_v35, 0.0  ;;  %v1739_v37 = vadd.f32 %v1737_v34, %v3099_v18  ;;  %v3180_v18 = vld [vmem:[%s3239_s8 + $0x4] ss:$8 sps:$4 sm:$0xff]   ;;  %s2730_s8 = smov [#allocation17]  }
0x14a0   :  { %1743 = vadd.xlane.f32.xlu1 %v1742_v36  ;;  %2368 = vmatpush3.bf16.msra.mxu0 %v3180_v18 }
0x14a1   :  { %v1745_v57 = vsel %vm245_vm3, %v1739_v37, 0.0  ;;  %2369 = vmatprep.subr.bf16.mxu0 %v2725_v0 }
0x14a2   :  { %1746 = vadd.xlane.f32.xlu0 %v1745_v57 }
0x14a4   :  { %2370 = vmatpush3.bf16.msra.mxu0 %v3186_v45 }
0x14a5   :  { %2383 = vmatprep.subr.bf16.mxu0 %v2725_v0 }
0x14b8   :  { %1856 = vrot.lane.b32.xlu0 %v3186_v45, %s2727_s9 }
0x152d   :  { %v1744_v38 = vpop.xlane.xlu1 %1743 }
0x152e   :  { %v1748_v39 = vmul.f32 0.03125, %v1744_v38 }
0x152f   :  { %v1747_v61 = vpop.xlane.xlu0 %1746 }
0x1530   :  { %v1750_v19 = vsub.f32 %v1738_v35, %v1748_v39  ;;  %v1749_v42 = vmul.f32 0.03125, %v1747_v61 }
0x1532   :  { %v1751_v41 = vsub.f32 %v1739_v37, %v1749_v42  ;;  %v1752_v43 = vmul.f32 %v1750_v19, %v1750_v19 }
0x1533   :  { %v1857_v2 = vpop.permute.xlu0 %1856 }
0x1534   :  { %v1754_v44 = vsel %vm245_vm3, %v1752_v43, 0.0  ;;  %v1753_v21 = vmul.f32 %v1751_v41, %v1751_v41 }
0x1535   :  { %1755 = vadd.xlane.f32.xlu1 %v1754_v44 }
0x1536   :  { %v1757_v40 = vsel %vm245_vm3, %v1753_v21, 0.0  ;;  %v2127_v21 = vld [vmem:[#allocation16 + $0x7] ss:$0 sm:$0xff] }
0x1539   :  { %1758 = vadd.xlane.f32.xlu1 %v1757_v40 }
0x154a   :  { %1854 = vrot.lane.b32.xlu1 %v3180_v18, %s2727_s9 }
0x15c2   :  { %v1756_v46 = vpop.xlane.xlu1 %1755 }
0x15c3   :  { %v1760_v47 = vmul.f32 0.03125, %v1756_v46 }
0x15c5   :  { %v1762_v48 = vadd.f32 1e-05, %v1760_v47  ;;  %v2128_v47 = vld [vmem:[#allocation16 + $0x8] ss:$0 sm:$0xff] }
0x15c6   :  { %v1759_v49 = vpop.xlane.xlu1 %1758 }
0x15c7   :  { %2468 = vrsqrt.f32 %v1762_v48  ;;  %v1761_v50 = vmul.f32 0.03125, %v1759_v49 }
0x15c9   :  { %v1763_v51 = vadd.f32 1e-05, %v1761_v50 }
0x15ca   :  { %v1855_v1 = vpop.permute.xlu1 %1854 }
0x15cb   :  { %2470 = vrsqrt.f32 %v1763_v51  ;;  %2376 = vmatpush3.bf16.msra.mxu1 %v1855_v1 }
0x15cc   :  { %2377 = vmatprep.subr.bf16.mxu1 %v2725_v0 }
0x15cf   :  { %2378 = vmatpush3.bf16.msra.mxu1 %v1857_v2 }
0x15d1   :  { %v2469_v52 = vpop.eup %2468 }
0x15d2   :  { %v1766_v53 = vmul.f32 %v2469_v52, %v1750_v19  ;;  %v2129_v52 = vld [vmem:[#allocation16 + $0x9] ss:$0 sm:$0xff] }
0x15d4   :  { %v1772_v56 = vmul.f32 %v2119_v54, %v1766_v53 }
0x15d5   :  { %v2471_v55 = vpop.eup %2470 }
0x15d6   :  { %v1767_v58 = vmul.f32 %v2471_v55, %v1751_v41  ;;  %v1778_v62 = vadd.f32 %v2120_v59, %v1772_v56 }
0x15d8   :  { %v1773_v60 = vmul.f32 %v2119_v54, %v1767_v58 }
0x15da   :  { %v1779_v63 = vadd.f32 %v2120_v59, %v1773_v60 }
0x15dc   :  { %v1784_v32 = vpack.c.bf16 %v1779_v63, %v1778_v62 }
0x15de   :  { %2372 = vmatmul.mubr.msk.bf16.vlgmr.msra.gmra.mrb[48].mxu0 %vm245_vm3, %v1784_v32 }
0x15df   :  { %2387 = vmatprep.mubr.msk.bf16.mxu0 %vm2726_vm0, %v2725_v0 }
0x16b1   :  { %v1839_v4 = vpop.f32.mrb[48].mxu0 }
0x16b2   :  { %v1840_v5 = vadd.f32 %v2121_v3, %v1839_v4  ;;  %v2373_v6 = vpop.f32.mrb[49].mxu0 }
0x16b3   :  { %v1842_v7 = vpop.f32.mrb[50].mxu0 }
0x16b4   :  { %v1843_v8 = vadd.f32 %v2121_v3, %v1842_v7  ;;  %v2374_v9 = vpop.f32.mrb[51].mxu0  ;;  %v1846_v10 = vmax.f32 %v1840_v5, 0.0 }
0x16b6   :  { %v1847_v11 = vmax.f32 %v1843_v8, 0.0 }
0x16b8   :  { %v1848_v12 = vpack.c.bf16 %v1847_v11, %v1846_v10 }
0x16ba   :  { %2380 = vmatmul.mubr.msk.bf16.vlgmr.msra.gmra.mrb[48].mxu1 %vm245_vm3, %v1848_v12 }
0x178d   :  { %v1897_v14 = vpop.f32.mrb[48].mxu1 }
0x178e   :  { %v1898_v15 = vadd.f32 %v2125_v13, %v1897_v14  ;;  %v2381_v16 = vpop.f32.mrb[49].mxu1 }
0x178f   :  { %v1900_v17 = vpop.f32.mrb[50].mxu1 }
0x1790   :  { %v1901_v20 = vadd.f32 %v2125_v13, %v1900_v17  ;;  %v2382_v22 = vpop.f32.mrb[51].mxu1  ;;  %v1904_v23 = vadd.f32 %v1898_v15, %v1778_v62  ;;  %v2131_v15 = vld [vmem:[#allocation16 + $0xa] ss:$0 sm:$0xff] }
0x1792   :  { %v1908_v24 = vsel %vm245_vm3, %v1904_v23, 0.0  ;;  %v1905_v25 = vadd.f32 %v1901_v20, %v1779_v63  ;;  %v2132_v20 = vld [vmem:[#allocation16 + $0xb] ss:$0 sm:$0xff] }
0x1793   :  { %1909 = vadd.xlane.f32.xlu1 %v1908_v24 }
0x1794   :  { %v1911_v26 = vsel %vm245_vm3, %v1905_v25, 0.0 }
0x1795   :  { %1912 = vadd.xlane.f32.xlu0 %v1911_v26 }
0x1820   :  { %v1910_v27 = vpop.xlane.xlu1 %1909 }
0x1821   :  { %v1914_v28 = vmul.f32 0.03125, %v1910_v27 }
0x1822   :  { %v1913_v29 = vpop.xlane.xlu0 %1912 }
0x1823   :  { %v1916_v30 = vsub.f32 %v1904_v23, %v1914_v28  ;;  %v1915_v31 = vmul.f32 0.03125, %v1913_v29 }
0x1825   :  { %v1917_v33 = vsub.f32 %v1905_v25, %v1915_v31  ;;  %v1918_v34 = vmul.f32 %v1916_v30, %v1916_v30 }
0x1827   :  { %v1920_v35 = vsel %vm245_vm3, %v1918_v34, 0.0  ;;  %v1919_v36 = vmul.f32 %v1917_v33, %v1917_v33 }
0x1828   :  { %1921 = vadd.xlane.f32.xlu1 %v1920_v35 }
0x1829   :  { %v1923_v37 = vsel %vm245_vm3, %v1919_v36, 0.0 }
0x182a   :  { %1924 = vadd.xlane.f32.xlu0 %v1923_v37 }
0x1839   :  { %1952 = vrot.lane.b32.xlu1 %v3180_v18, %s2719_s20 }
0x1840   :  { %1954 = vrot.lane.b32.xlu0 %v3186_v45, %s2719_s20  ;;  %s2051_s20 = sshll.u32 %s2730_s8, 4  ;;  %s2052_s20 = int_to_ptr.vmem [resolvable:$true] %s2051_s20 }
0x1841   :  { %s2678_s4 = scalar_lea.vmem %s2052_s20, 256  ;;  %p2683_p3 = scmp.lt.s32.totalorder %s2052_s20, %s2052_s20 }
0x1842   :  { %p2679_p2 = scmp.ne.s32.totalorder %s2052_s20, %s2678_s4  ;;  %p2684_p4 = scmp.lt.s32.totalorder %s2678_s4, %s2678_s4 }
0x1844   :  { %p2685_p5 = por %p2684_p4, %p2683_p3 }
0x1846   :  { %p2686_p6 = pnand %p2685_p5, %p2679_p2 }
0x18b5   :  { %v1922_v57 = vpop.xlane.xlu1 %1921 }
0x18b6   :  { %v1926_v38 = vmul.f32 0.03125, %v1922_v57 }
0x18b7   :  { %v1925_v39 = vpop.xlane.xlu0 %1924 }
0x18b8   :  { %v1928_v61 = vadd.f32 1e-05, %v1926_v38  ;;  %v1927_v19 = vmul.f32 0.03125, %v1925_v39 }
0x18b9   :  { %v1953_v42 = vpop.permute.xlu1 %1952 }
0x18ba   :  { %2472 = vrsqrt.f32 %v1928_v61  ;;  %v1929_v41 = vadd.f32 1e-05, %v1927_v19  ;;  %2384 = vmatpush3.bf16.msra.mxu0 %v1953_v42 }
0x18bb   :  { %2385 = vmatprep.subr.bf16.mxu0 %v2725_v0  ;;  %v1955_v43 = vpop.permute.xlu0 %1954 }
0x18bc   :  { %2474 = vrsqrt.f32 %v1929_v41 }
0x18be   :  { %2386 = vmatpush3.bf16.msra.mxu0 %v1955_v43 }
0x18c4   :  { %v2473_v44 = vpop.eup %2472 }
0x18c5   :  { %v1932_v40 = vmul.f32 %v2473_v44, %v1916_v30 }
0x18c6   :  { %v2475_v18 = vpop.eup %2474 }
0x18c7   :  { %v1938_v46 = vmul.f32 %v2127_v21, %v1932_v40  ;;  %v1933_v45 = vmul.f32 %v2475_v18, %v1917_v33 }
0x18c9   :  { %v1939_v48 = vmul.f32 %v2127_v21, %v1933_v45  ;;  %v1944_v49 = vadd.f32 %v2128_v47, %v1938_v46 }
0x18cb   :  { %v1945_v50 = vadd.f32 %v2128_v47, %v1939_v48 }
0x18cd   :  { %v1946_v51 = vpack.c.bf16 %v1945_v50, %v1944_v49 }
0x18cf   :  { %2388 = vmatmul.mubr.msk.bf16.vlgmr.msra.gmra.mrb[52].mxu0 %vm245_vm3, %v1946_v51 }
0x19a2   :  { %v1995_v53 = vpop.f32.mrb[52].mxu0 }
0x19a3   :  { %v1996_v54 = vadd.f32 %v2129_v52, %v1995_v53  ;;  %v2389_v0 = vpop.f32.mrb[53].mxu0 }
0x19a4   :  { %v1998_v55 = vpop.f32.mrb[54].mxu0 }
0x19a5   :  { %v1999_v56 = vadd.f32 %v2129_v52, %v1998_v55  ;;  %v2390_v58 = vpop.f32.mrb[55].mxu0  ;;  %v2004_v59 = vsel %vm245_vm3, %v1996_v54, 0.0 }
0x19a6   :  { %2005 = vadd.xlane.f32.xlu1 %v2004_v59 }
0x19a7   :  { %v2007_v60 = vsel %vm245_vm3, %v1999_v56, 0.0 }
0x19a8   :  { %2008 = vadd.xlane.f32.xlu0 %v2007_v60 }
0x1a33   :  { %v2006_v62 = vpop.xlane.xlu1 %2005 }
0x1a34   :  { %v2010_v63 = vmul.f32 0.03125, %v2006_v62 }
0x1a35   :  { %v2009_v32 = vpop.xlane.xlu0 %2008 }
0x1a36   :  { %v2012_v1 = vsub.f32 %v1996_v54, %v2010_v63  ;;  %v2011_v2 = vmul.f32 0.03125, %v2009_v32 }
0x1a38   :  { %v2013_v3 = vsub.f32 %v1999_v56, %v2011_v2  ;;  %v2014_v4 = vmul.f32 %v2012_v1, %v2012_v1 }
0x1a3a   :  { %v2016_v5 = vsel %vm245_vm3, %v2014_v4, 0.0  ;;  %v2015_v6 = vmul.f32 %v2013_v3, %v2013_v3 }
0x1a3b   :  { %2017 = vadd.xlane.f32.xlu1 %v2016_v5 }
0x1a3c   :  { %v2019_v7 = vsel %vm245_vm3, %v2015_v6, 0.0 }
0x1a3d   :  { %2020 = vadd.xlane.f32.xlu0 %v2019_v7 }
0x1ac8   :  { %v2018_v8 = vpop.xlane.xlu1 %2017 }
0x1ac9   :  { %v2022_v9 = vmul.f32 0.03125, %v2018_v8 }
0x1aca   :  { %v2021_v10 = vpop.xlane.xlu0 %2020 }
0x1acb   :  { %v2024_v11 = vadd.f32 1e-05, %v2022_v9  ;;  %v2023_v12 = vmul.f32 0.03125, %v2021_v10 }
0x1acd   :  { %2476 = vrsqrt.f32 %v2024_v11  ;;  %v2025_v13 = vadd.f32 1e-05, %v2023_v12 }
0x1acf   :  { %2478 = vrsqrt.f32 %v2025_v13 }
0x1ad7   :  { %v2477_v14 = vpop.eup %2476 }
0x1ad8   :  { %v2028_v16 = vmul.f32 %v2477_v14, %v2012_v1 }
0x1ad9   :  { %v2479_v17 = vpop.eup %2478 }
0x1ada   :  { %v2029_v22 = vmul.f32 %v2479_v17, %v2013_v3  ;;  %v2034_v23 = vmul.f32 %v2131_v15, %v2028_v16 }
0x1adc   :  { %v2035_v24 = vmul.f32 %v2131_v15, %v2029_v22  ;;  %v2040_v25 = vadd.f32 %v2132_v20, %v2034_v23 }
0x1ade   :  { %v2041_v26 = vadd.f32 %v2132_v20, %v2035_v24  ;;  %v2042_v27 = vmax.f32 %v2040_v25, 0.0 }
0x1ae0   :  { %v2043_v28 = vmax.f32 %v2041_v26, 0.0  ;;  %2044 = vst.msk [vmem:[#allocation17] sm:$0xff] %vm245_vm3, %v2042_v27 }
0x1ae2   :  { %2045 = vst.msk [vmem:[#allocation17 + $0x8] sm:$0xff] %vm245_vm3, %v2043_v28 }
0x1ae3   :  { %2689 = shalt.err (!%p2686_p6)
}
0x1ae4   :  { %s2690_s3 = scalar_lea.hbm %s3241_s10, 256 }
0x1ae5   :  { %p2691_p7 = scmp.ne.s32.totalorder %s3241_s10, %s2690_s3  ;;  %p2694_p8 = scmp.lt.u32.totalorder %s2690_s3, %s3241_s10 }
0x1ae7   :  { %p2696_p9 = pnand %p2694_p8, %p2691_p7 }
0x1ae9   :  { %2699 = shalt.err (!%p2696_p9)
}
0x1aea   :  { %2057 = dma.vmem_to_hbm [thread:$0]  %s2052_s20, 256, %s3241_s10, [#allocation4], %s2714_s25, %s2714_s25, %s2715_s26  }
0x1aeb   :  { %2710 = dma.done.wait [#allocation4], 256  }
0x1aec   :  { %2711 = vsyncadd [#allocation4], 4294967040 }
0x1aed   :  { %2061 = vsyncpa [#allocation3], 1 }
0x1aee   :  { %2062 = vsyncpa [#allocation6], 1 }
0x1aef   :  { %2063 = vsyncpa [#allocation9], 1 }
0x1af0   :  { %2064 = vsyncpa [#allocation12], 1 }
0x1af1   :  { %2065 = vsyncpa [#allocation15], 1 }
0x1af2   :  { %2066 = vsyncpa [#allocation4], 1 }

</bundles_post_ra>
